<compile_context>
chip_gen: v5e
topology: v5e:2x2
jax: 0.10.0
libtpu: 0.0.40
codegen_flags: <defaults>
</compile_context>

<pallas_src>
import jax
import jax.numpy as jnp
from jax.experimental import pallas as pl
from jax.experimental.pallas import tpu as pltpu


TILE_E = 512  # edge tile (lane axis): multiple of 256 fills the v6e/v7x MXU.


def gnn_kernel(
    # per-tile data (edges on lanes)
    ecomb_ref,     # [2ec, tE] bf16   cat(x_edges_fwd, x_edges_bwd)^T
    send_ref,      # [1, tE]   int32  sender ids   (-1 on padded edges)
    recv_ref,      # [1, tE]   int32  receiver ids (<= -(N+1) on padded edges)
    # fused edge-MLP params (bf16 matmul operands, f32 biases)
    pnodes_ref,    # [2ec, 2N] bf16   [P_src | P_dst]^T  (b1 folded into P_src)
    w1e_ref,       # [2ec, 2ec] bf16  block-diag edge-feature projection^T
    w2e_ref,       # [2ec, 2ec] bf16  block-diag layer-2^T
    b2_ref,        # [2ec, 1]  f32
    # node-MLP params
    pnodeb_ref,    # [N, nc]   f32    x_nodes @ Wn1[:nc] + bn1 (precomputed)
    wn1a_ref,      # [2ec, nc] bf16
    wn2_ref,       # [nc, nc]  bf16
    bn2_ref,       # [1, nc]   f32
    # outputs
    nodes_out_ref,  # [N, nc]   f32   (resident; written at the last step)
    edges_out_ref,  # [2ec, tE] f32   cat(efwd_upd, ebwd_upd)^T tile
    # scratch
    acc_ref,        # [N, 2ec]  f32   scatter-add accumulator
):
    f32, bf16 = jnp.float32, jnp.bfloat16
    step = pl.program_id(0)

    @pl.when(step == 0)
    def _init():
        acc_ref[...] = jnp.zeros_like(acc_ref)

    N = acc_ref.shape[0]
    tE = ecomb_ref.shape[1]

    send = send_ref[...]                      # [1, tE]
    recv = recv_ref[...]                      # [1, tE]

    # ---- stacked sender|receiver one-hot, built directly in [2N, tE] layout
    #      (no lane concat / relayout).  Padded edges never match the iota.
    iota2 = jax.lax.broadcasted_iota(jnp.int32, (2 * N, tE), 0)
    stacked_oh = ((iota2 == send) | (iota2 == (recv + N))).astype(bf16)  # [2N,tE]
    iota1 = jax.lax.broadcasted_iota(jnp.int32, (N, tE), 0)
    recv_oh = (iota1 == recv).astype(bf16)                               # [N, tE]

    # ---- fused fwd|bwd edge MLP, feature-major:
    #      h^T = P^T @ one_hot  +  W1e^T @ ecomb^T          (b1 folded into P)
    h = (jnp.dot(pnodes_ref[...], stacked_oh, preferred_element_type=f32)
         + jnp.dot(w1e_ref[...], ecomb_ref[...], preferred_element_type=f32))
    h = jnp.maximum(h, 0.0).astype(bf16)                                 # [2ec,tE]
    e_out = (jnp.dot(w2e_ref[...], h, preferred_element_type=f32)
             + b2_ref[...])                                              # [2ec,tE]
    edges_out_ref[...] = e_out                     # lane-dense f32 stores
    e_out_bf = e_out.astype(bf16)

    # ---- scatter_add over receivers: contract over the edge (lane) axis.
    #      acc[n, c] += sum_e recv_oh[n, e] * e_out[c, e]
    acc_ref[...] += jax.lax.dot_general(
        recv_oh, e_out_bf,
        dimension_numbers=(((1,), (1,)), ((), ())),
        preferred_element_type=f32)

    # ---- node MLP once all edge tiles have been accumulated.
    @pl.when(step == pl.num_programs(0) - 1)
    def _finalize():
        aggr = acc_ref[...].astype(bf16)                                 # [N,2ec]
        hn = pnodeb_ref[...] + jnp.dot(aggr, wn1a_ref[...],
                                       preferred_element_type=f32)
        hn = jnp.maximum(hn, 0.0).astype(bf16)
        nodes_out_ref[...] = (
            jnp.dot(hn, wn2_ref[...], preferred_element_type=f32)
            + bn2_ref[...])


def init_params(key, node_channels, edge_channels):
    """Deterministic parameter init. Weights stored as [in, out], biases [1, out]."""
    nc, ec = node_channels, edge_channels
    keys = jax.random.split(key, 6)

    def lin(k, d_in, d_out):
        kw, kb = jax.random.split(k)
        w = jax.random.normal(kw, (d_in, d_out), jnp.float32) * 0.1
        b = jax.random.normal(kb, (1, d_out), jnp.float32) * 0.1
        return w, b

    w1f, b1f = lin(keys[0], 2 * nc + ec, ec)
    w2f, b2f = lin(keys[1], ec, ec)
    w1b, b1b = lin(keys[2], 2 * nc + ec, ec)
    w2b, b2b = lin(keys[3], ec, ec)
    wn1, bn1 = lin(keys[4], nc + 2 * ec, nc)
    wn2, bn2 = lin(keys[5], nc, nc)
    return dict(w1f=w1f, b1f=b1f, w2f=w2f, b2f=b2f,
                w1b=w1b, b1b=b1b, w2b=w2b, b2b=b2b,
                wn1=wn1, bn1=bn1, wn2=wn2, bn2=bn2)


@jax.jit
def gnn_layer_pallas(x_nodes, x_edges_fwd, x_edges_bwd, edge_index, params):
    f32, bf16 = jnp.float32, jnp.bfloat16
    N, nc = x_nodes.shape
    E, ec = x_edges_fwd.shape
    two_ec = 2 * ec

    tE = min(TILE_E, max(128, pl.cdiv(E, 128) * 128))
    E_pad = pl.cdiv(E, tE) * tE
    pad = E_pad - E

    # ---- fuse fwd/bwd edge-MLP params (math-identical to concat-then-matmul)
    w1f, w1b = params["w1f"], params["w1b"]
    w2f, w2b = params["w2f"], params["w2b"]
    wn1 = params["wn1"]
    zec = jnp.zeros((ec, ec), f32)
    w1_src = jnp.concatenate([w1f[:nc], w1b[nc:2 * nc]], axis=1)      # [nc, 2ec]
    w1_dst = jnp.concatenate([w1f[nc:2 * nc], w1b[:nc]], axis=1)      # [nc, 2ec]
    b1 = jnp.concatenate([params["b1f"], params["b1b"]], axis=1)      # [1, 2ec]
    w1_e = jnp.concatenate(                                           # [2ec, 2ec]
        [jnp.concatenate([w1f[2 * nc:], zec], axis=1),
         jnp.concatenate([zec, w1b[2 * nc:]], axis=1)], axis=0)
    w2_e = jnp.concatenate(                                           # [2ec, 2ec]
        [jnp.concatenate([w2f, zec], axis=1),
         jnp.concatenate([zec, w2b], axis=1)], axis=0)
    b2 = jnp.concatenate([params["b2f"], params["b2b"]], axis=1)      # [1, 2ec]

    # ---- hoisted projections (f32 in the wrapper, bf16 into the kernel).
    p_src = x_nodes @ w1_src + b1                                     # [N, 2ec]
    p_dst = x_nodes @ w1_dst                                          # [N, 2ec]
    p_nodes_t = jnp.concatenate([p_src, p_dst], axis=0).T.astype(bf16)  # [2ec,2N]
    w1_e_t = w1_e.T.astype(bf16)
    w2_e_t = w2_e.T.astype(bf16)
    b2_t = b2.T                                                       # [2ec, 1]
    p_node_b = x_nodes @ wn1[:nc] + params["bn1"]                     # [N, nc] f32
    wn1_a = wn1[nc:].astype(bf16)                                     # [2ec, nc]
    wn2 = params["wn2"].astype(bf16)
    bn2 = params["bn2"]

    # ---- edge data, feature-major, padded to whole tiles; pad ids never
    #      match any in-kernel iota value (sender: -1, receiver: -(N+1)).
    sender = edge_index[0].astype(jnp.int32)
    receiver = edge_index[1].astype(jnp.int32)
    ecomb_t = jnp.concatenate([x_edges_fwd, x_edges_bwd], axis=1).T   # [2ec, E]
    if pad:
        sender = jnp.pad(sender, (0, pad), constant_values=-1)
        receiver = jnp.pad(receiver, (0, pad), constant_values=-(N + 1))
        ecomb_t = jnp.pad(ecomb_t, ((0, 0), (0, pad)))
    ecomb_t = ecomb_t.astype(bf16)
    send_row = sender[None, :]                                        # [1, E_pad]
    recv_row = receiver[None, :]                                      # [1, E_pad]

    const = lambda e: (0, 0)
    tile = lambda e: (0, e)
    inputs = (ecomb_t, send_row, recv_row,
              p_nodes_t, w1_e_t, w2_e_t, b2_t,
              p_node_b, wn1_a, wn2, bn2)
    in_specs = [
        pl.BlockSpec((two_ec, tE), tile),          # ecomb^T tile
        pl.BlockSpec((1, tE), tile),               # sender ids
        pl.BlockSpec((1, tE), tile),               # receiver ids
        pl.BlockSpec((two_ec, 2 * N), const),      # projected node tables^T
        pl.BlockSpec((two_ec, two_ec), const),     # w1_e^T
        pl.BlockSpec((two_ec, two_ec), const),     # w2_e^T
        pl.BlockSpec((two_ec, 1), const),          # b2^T
        pl.BlockSpec((N, nc), const),              # node-MLP node-term
        pl.BlockSpec((two_ec, nc), const),         # wn1_a
        pl.BlockSpec((nc, nc), const),             # wn2
        pl.BlockSpec((1, nc), const),              # bn2
    ]
    out_specs = (
        pl.BlockSpec((N, nc), const),              # nodes_out (resident)
        pl.BlockSpec((two_ec, tE), tile),          # edges_out^T tile (lane-dense)
    )
    out_shape = (
        jax.ShapeDtypeStruct((N, nc), f32),
        jax.ShapeDtypeStruct((two_ec, E_pad), f32),
    )

    # explicit scoped-VMEM limit (v5e default is 16 MiB; v7x physical 64 MiB).
    tile_bytes = tE * (two_ec * 2 + 2 * 8 * 4 + two_ec * 4)     # in/out tiles
    temp_bytes = tE * (3 * N * 2 + two_ec * 10)                 # one-hots + h/e_out
    resident_bytes = (2 * N * two_ec * 2 + 2 * N * nc * 4 + N * two_ec * 4
                      + 4 * two_ec * two_ec * 2 + (1 << 16))
    vmem_limit = int(min(max(2 * (2 * tile_bytes + temp_bytes + resident_bytes),
                             32 * 1024 * 1024),
                         64 * 1024 * 1024))

    nodes_out, edges_out_t = pl.pallas_call(
        gnn_kernel,
        grid=(E_pad // tE,),
        in_specs=in_specs,
        out_specs=out_specs,
        out_shape=out_shape,
        scratch_shapes=[pltpu.VMEM((N, two_ec), f32)],
        compiler_params=pltpu.CompilerParams(
            dimension_semantics=("arbitrary",),    # edge axis is a reduction
            vmem_limit_bytes=vmem_limit),
    )(*inputs)

    edges_out = edges_out_t.T[:E]                  # back to [E, 2ec]
    return nodes_out, edges_out[:, :ec], edges_out[:, ec:]


def gnn_layer_ref(x_nodes, x_edges_fwd, x_edges_bwd, edge_index, params):
    """Pure-JAX f32 reference mirroring the PyTorch forward."""
    sender, receiver = edge_index[0], edge_index[1]

    def mlp(x, w1, b1, w2, b2):
        h = jnp.maximum(x @ w1 + b1, 0.0)
        return h @ w2 + b2

    state_fwd = jnp.concatenate(
        (x_nodes[sender], x_nodes[receiver], x_edges_fwd), axis=1)
    efwd_upd = mlp(state_fwd, params["w1f"], params["b1f"],
                   params["w2f"], params["b2f"])
    state_bwd = jnp.concatenate(
        (x_nodes[receiver], x_nodes[sender], x_edges_bwd), axis=1)
    ebwd_upd = mlp(state_bwd, params["w1b"], params["b1b"],
                   params["w2b"], params["b2b"])
    combined = jnp.concatenate((efwd_upd, ebwd_upd), axis=1)
    aggr = jnp.zeros((x_nodes.shape[0], combined.shape[1]), combined.dtype)
    aggr = aggr.at[receiver].add(combined)
    node_state = jnp.concatenate((x_nodes, aggr), axis=1)
    nodes_upd = mlp(node_state, params["wn1"], params["bn1"],
                    params["wn2"], params["bn2"])
    return nodes_upd, efwd_upd, ebwd_upd


if __name__ == "__main__":
    node_channels = 16
    edge_channels = 16
    num_nodes = 64
    num_edges = 600   # > TILE_E and not a tile multiple -> exercises multi-step
                      # accumulation and edge padding.

    key = jax.random.PRNGKey(0)
    k_nodes, k_efwd, k_ebwd, k_src, k_dst, k_params = jax.random.split(key, 6)

    x_nodes = jax.random.normal(k_nodes, (num_nodes, node_channels), jnp.float32)
    x_edges_fwd = jax.random.normal(k_efwd, (num_edges, edge_channels), jnp.float32)
    x_edges_bwd = jax.random.normal(k_ebwd, (num_edges, edge_channels), jnp.float32)
    sender = jax.random.randint(k_src, (num_edges,), 0, num_nodes, jnp.int32)
    receiver = jax.random.randint(k_dst, (num_edges,), 0, num_nodes, jnp.int32)
    edge_index = jnp.stack([sender, receiver], axis=0)

    params = init_params(k_params, node_channels, edge_channels)

    out_nodes, out_efwd, out_ebwd = gnn_layer_pallas(
        x_nodes, x_edges_fwd, x_edges_bwd, edge_index, params)
    jax.block_until_ready((out_nodes, out_efwd, out_ebwd))

    ref_nodes, ref_efwd, ref_ebwd = gnn_layer_ref(
        x_nodes, x_edges_fwd, x_edges_bwd, edge_index, params)

    # bf16 matmul operands (f32 accumulation) -> ~1% relative error budget.
    assert jnp.allclose(out_efwd, ref_efwd, rtol=2e-2, atol=2e-2)
    assert jnp.allclose(out_ebwd, ref_ebwd, rtol=2e-2, atol=2e-2)
    assert jnp.allclose(out_nodes, ref_nodes, rtol=2e-2, atol=2e-2)

    print("KERNEL_OK")
</pallas_src>

<mosaic_0001>
module attributes {stable_mosaic.version = 11 : i64} {
  func.func @gnn_kernel(%arg0: i32, %arg1: memref<32x512xbf16, #tpu.memory_space<vmem>>, %arg2: memref<1x512xi32, #tpu.memory_space<vmem>>, %arg3: memref<1x512xi32, #tpu.memory_space<vmem>>, %arg4: memref<32x128xbf16, #tpu.memory_space<vmem>>, %arg5: memref<32x32xbf16, #tpu.memory_space<vmem>>, %arg6: memref<32x32xbf16, #tpu.memory_space<vmem>>, %arg7: memref<32x1xf32, #tpu.memory_space<vmem>>, %arg8: memref<64x16xf32, #tpu.memory_space<vmem>>, %arg9: memref<32x16xbf16, #tpu.memory_space<vmem>>, %arg10: memref<16x16xbf16, #tpu.memory_space<vmem>>, %arg11: memref<1x16xf32, #tpu.memory_space<vmem>>, %arg12: memref<64x16xf32, #tpu.memory_space<vmem>>, %arg13: memref<32x512xf32, #tpu.memory_space<vmem>>, %arg14: memref<64x32xf32, #tpu.memory_space<vmem>>) attributes {dimension_semantics = [#tpu.dimension_semantics<arbitrary>], iteration_bounds = array<i64: 2>, scalar_prefetch = 0 : i64, scratch_operands = 1 : i64, tpu.core_type = #tpu.core_type<tc>, window_params = [{transform_indices = @transform_0, window_bounds = array<i64: 32, 512>}, {transform_indices = @transform_1, window_bounds = array<i64: 1, 512>}, {transform_indices = @transform_2, window_bounds = array<i64: 1, 512>}, {pipeline_mode = #tpu.pipeline_mode<synchronous>, transform_indices = @transform_3, window_bounds = array<i64: 32, 128>}, {pipeline_mode = #tpu.pipeline_mode<synchronous>, transform_indices = @transform_4, window_bounds = array<i64: 32, 32>}, {pipeline_mode = #tpu.pipeline_mode<synchronous>, transform_indices = @transform_5, window_bounds = array<i64: 32, 32>}, {pipeline_mode = #tpu.pipeline_mode<synchronous>, transform_indices = @transform_6, window_bounds = array<i64: 32, 1>}, {pipeline_mode = #tpu.pipeline_mode<synchronous>, transform_indices = @transform_7, window_bounds = array<i64: 64, 16>}, {pipeline_mode = #tpu.pipeline_mode<synchronous>, transform_indices = @transform_8, window_bounds = array<i64: 32, 16>}, {pipeline_mode = #tpu.pipeline_mode<synchronous>, transform_indices = @transform_9, window_bounds = array<i64: 16, 16>}, {pipeline_mode = #tpu.pipeline_mode<synchronous>, transform_indices = @transform_10, window_bounds = array<i64: 1, 16>}, {pipeline_mode = #tpu.pipeline_mode<synchronous>, transform_indices = @transform_11, window_bounds = array<i64: 64, 16>}, {transform_indices = @transform_12, window_bounds = array<i64: 32, 512>}]} {
    %c0_i32 = arith.constant 0 : i32
    %0 = arith.cmpi eq, %arg0, %c0_i32 : i32
    %1 = arith.extui %0 : i1 to i32
    %c0_i32_0 = arith.constant 0 : i32
    %2 = arith.cmpi ne, %1, %c0_i32_0 : i32
    scf.if %2 {
      %cst_25 = arith.constant 0.000000e+00 : f32
      %45 = vector.broadcast %cst_25 : f32 to vector<64x32xf32>
      %c0_26 = arith.constant 0 : index
      %c0_27 = arith.constant 0 : index
      %46 = vector.load %arg14[%c0_26, %c0_27] : memref<64x32xf32, #tpu.memory_space<vmem>>, vector<64x32xf32>
      tpu.vector_store %arg14[%c0_26, %c0_27], %45 {strides = array<i32>} : memref<64x32xf32, #tpu.memory_space<vmem>>, vector<64x32xf32>,
    } else {
    }
    %c0 = arith.constant 0 : index
    %c0_1 = arith.constant 0 : index
    %3 = vector.load %arg2[%c0, %c0_1] : memref<1x512xi32, #tpu.memory_space<vmem>>, vector<1x512xi32>
    %c0_2 = arith.constant 0 : index
    %c0_3 = arith.constant 0 : index
    %4 = vector.load %arg3[%c0_2, %c0_3] : memref<1x512xi32, #tpu.memory_space<vmem>>, vector<1x512xi32>
    %5 = tpu.iota {dimensions = array<i32: 0>} : vector<128x512xi32>
    %6 = vector.broadcast %3 : vector<1x512xi32> to vector<128x512xi32>
    %7 = arith.cmpi eq, %5, %6 : vector<128x512xi32>
    %c64_i32 = arith.constant 64 : i32
    %8 = vector.broadcast %c64_i32 : i32 to vector<1x512xi32>
    %9 = arith.addi %4, %8 : vector<1x512xi32>
    %10 = vector.broadcast %9 : vector<1x512xi32> to vector<128x512xi32>
    %11 = arith.cmpi eq, %5, %10 : vector<128x512xi32>
    %12 = arith.ori %7, %11 : vector<128x512xi1>
    %13 = arith.extui %12 : vector<128x512xi1> to vector<128x512xi32>
    %14 = arith.sitofp %13 : vector<128x512xi32> to vector<128x512xf32>
    %15 = arith.truncf %14 : vector<128x512xf32> to vector<128x512xbf16>
    %16 = tpu.iota {dimensions = array<i32: 0>} : vector<64x512xi32>
    %17 = vector.broadcast %4 : vector<1x512xi32> to vector<64x512xi32>
    %18 = arith.cmpi eq, %16, %17 : vector<64x512xi32>
    %19 = arith.extui %18 : vector<64x512xi1> to vector<64x512xi32>
    %20 = arith.sitofp %19 : vector<64x512xi32> to vector<64x512xf32>
    %21 = arith.truncf %20 : vector<64x512xf32> to vector<64x512xbf16>
    %c0_4 = arith.constant 0 : index
    %c0_5 = arith.constant 0 : index
    %22 = vector.load %arg4[%c0_4, %c0_5] : memref<32x128xbf16, #tpu.memory_space<vmem>>, vector<32x128xbf16>
    %cst = arith.constant dense<0.000000e+00> : vector<32x512xf32>
    %23 = tpu.matmul %22, %15, %cst {dimension_numbers = #tpu.dot_dimension_numbers<[1], [0], [0], [1], [0, 0, 1, 1], [], []>} : vector<32x128xbf16>, vector<128x512xbf16>, vector<32x512xf32> -> vector<32x512xf32>
    %c0_6 = arith.constant 0 : index
    %c0_7 = arith.constant 0 : index
    %24 = vector.load %arg5[%c0_6, %c0_7] : memref<32x32xbf16, #tpu.memory_space<vmem>>, vector<32x32xbf16>
    %c0_8 = arith.constant 0 : index
    %c0_9 = arith.constant 0 : index
    %25 = vector.load %arg1[%c0_8, %c0_9] : memref<32x512xbf16, #tpu.memory_space<vmem>>, vector<32x512xbf16>
    %cst_10 = arith.constant dense<0.000000e+00> : vector<32x512xf32>
    %26 = tpu.matmul %24, %25, %cst_10 {dimension_numbers = #tpu.dot_dimension_numbers<[1], [0], [0], [1], [0, 0, 1, 1], [], []>} : vector<32x32xbf16>, vector<32x512xbf16>, vector<32x512xf32> -> vector<32x512xf32>
    %27 = arith.addf %23, %26 : vector<32x512xf32>
    %cst_11 = arith.constant 0.000000e+00 : f32
    %28 = vector.broadcast %cst_11 : f32 to vector<32x512xf32>
    %29 = arith.maximumf %27, %28 : vector<32x512xf32>
    %30 = arith.truncf %29 : vector<32x512xf32> to vector<32x512xbf16>
    %c0_12 = arith.constant 0 : index
    %c0_13 = arith.constant 0 : index
    %31 = vector.load %arg6[%c0_12, %c0_13] : memref<32x32xbf16, #tpu.memory_space<vmem>>, vector<32x32xbf16>
    %cst_14 = arith.constant dense<0.000000e+00> : vector<32x512xf32>
    %32 = tpu.matmul %31, %30, %cst_14 {dimension_numbers = #tpu.dot_dimension_numbers<[1], [0], [0], [1], [0, 0, 1, 1], [], []>} : vector<32x32xbf16>, vector<32x512xbf16>, vector<32x512xf32> -> vector<32x512xf32>
    %c0_15 = arith.constant 0 : index
    %c0_16 = arith.constant 0 : index
    %33 = vector.load %arg7[%c0_15, %c0_16] : memref<32x1xf32, #tpu.memory_space<vmem>>, vector<32x1xf32>
    %34 = vector.broadcast %33 : vector<32x1xf32> to vector<32x512xf32>
    %35 = arith.addf %32, %34 : vector<32x512xf32>
    %c0_17 = arith.constant 0 : index
    %c0_18 = arith.constant 0 : index
    %36 = vector.load %arg13[%c0_17, %c0_18] : memref<32x512xf32, #tpu.memory_space<vmem>>, vector<32x512xf32>
    tpu.vector_store %arg13[%c0_17, %c0_18], %35 {strides = array<i32>} : memref<32x512xf32, #tpu.memory_space<vmem>>, vector<32x512xf32>,
    %37 = arith.truncf %35 : vector<32x512xf32> to vector<32x512xbf16>
    %c0_19 = arith.constant 0 : index
    %c0_20 = arith.constant 0 : index
    %38 = vector.load %arg14[%c0_19, %c0_20] : memref<64x32xf32, #tpu.memory_space<vmem>>, vector<64x32xf32>
    %cst_21 = arith.constant dense<0.000000e+00> : vector<64x32xf32>
    %39 = tpu.matmul %21, %37, %cst_21 {dimension_numbers = #tpu.dot_dimension_numbers<[1], [1], [0], [0], [0, 0, 1, 0], [], []>} : vector<64x512xbf16>, vector<32x512xbf16>, vector<64x32xf32> -> vector<64x32xf32>
    %40 = arith.addf %38, %39 : vector<64x32xf32>
    %c0_22 = arith.constant 0 : index
    %c0_23 = arith.constant 0 : index
    %41 = vector.load %arg14[%c0_22, %c0_23] : memref<64x32xf32, #tpu.memory_space<vmem>>, vector<64x32xf32>
    tpu.vector_store %arg14[%c0_22, %c0_23], %40 {strides = array<i32>} : memref<64x32xf32, #tpu.memory_space<vmem>>, vector<64x32xf32>,
    %c1_i32 = arith.constant 1 : i32
    %42 = arith.cmpi eq, %arg0, %c1_i32 : i32
    %43 = arith.extui %42 : i1 to i32
    %c0_i32_24 = arith.constant 0 : i32
    %44 = arith.cmpi ne, %43, %c0_i32_24 : i32
    scf.if %44 {
      %c0_25 = arith.constant 0 : index
      %c0_26 = arith.constant 0 : index
      %45 = vector.load %arg14[%c0_25, %c0_26] : memref<64x32xf32, #tpu.memory_space<vmem>>, vector<64x32xf32>
      %46 = arith.truncf %45 : vector<64x32xf32> to vector<64x32xbf16>
      %c0_27 = arith.constant 0 : index
      %c0_28 = arith.constant 0 : index
      %47 = vector.load %arg8[%c0_27, %c0_28] : memref<64x16xf32, #tpu.memory_space<vmem>>, vector<64x16xf32>
      %c0_29 = arith.constant 0 : index
      %c0_30 = arith.constant 0 : index
      %48 = vector.load %arg9[%c0_29, %c0_30] : memref<32x16xbf16, #tpu.memory_space<vmem>>, vector<32x16xbf16>
      %cst_31 = arith.constant dense<0.000000e+00> : vector<64x16xf32>
      %49 = tpu.matmul %46, %48, %cst_31 {dimension_numbers = #tpu.dot_dimension_numbers<[1], [0], [0], [1], [0, 0, 1, 1], [], []>} : vector<64x32xbf16>, vector<32x16xbf16>, vector<64x16xf32> -> vector<64x16xf32>
      %50 = arith.addf %47, %49 : vector<64x16xf32>
      %cst_32 = arith.constant 0.000000e+00 : f32
      %51 = vector.broadcast %cst_32 : f32 to vector<64x16xf32>
      %52 = arith.maximumf %50, %51 : vector<64x16xf32>
      %53 = arith.truncf %52 : vector<64x16xf32> to vector<64x16xbf16>
      %c0_33 = arith.constant 0 : index
      %c0_34 = arith.constant 0 : index
      %54 = vector.load %arg10[%c0_33, %c0_34] : memref<16x16xbf16, #tpu.memory_space<vmem>>, vector<16x16xbf16>
      %cst_35 = arith.constant dense<0.000000e+00> : vector<64x16xf32>
      %55 = tpu.matmul %53, %54, %cst_35 {dimension_numbers = #tpu.dot_dimension_numbers<[1], [0], [0], [1], [0, 0, 1, 1], [], []>} : vector<64x16xbf16>, vector<16x16xbf16>, vector<64x16xf32> -> vector<64x16xf32>
      %c0_36 = arith.constant 0 : index
      %c0_37 = arith.constant 0 : index
      %56 = vector.load %arg11[%c0_36, %c0_37] : memref<1x16xf32, #tpu.memory_space<vmem>>, vector<1x16xf32>
      %57 = vector.broadcast %56 : vector<1x16xf32> to vector<64x16xf32>
      %58 = arith.addf %55, %57 : vector<64x16xf32>
      %c0_38 = arith.constant 0 : index
      %c0_39 = arith.constant 0 : index
      %59 = vector.load %arg12[%c0_38, %c0_39] : memref<64x16xf32, #tpu.memory_space<vmem>>, vector<64x16xf32>
      tpu.vector_store %arg12[%c0_38, %c0_39], %58 {strides = array<i32>} : memref<64x16xf32, #tpu.memory_space<vmem>>, vector<64x16xf32>,
    } else {
    }
    return
  }
  func.func @transform_0(%arg0: i32) -> (i32, i32) {
    %c0_i32 = arith.constant 0 : i32
    %c0_i32_0 = arith.constant 0 : i32
    return %c0_i32, %arg0 : i32, i32
  }
  func.func @transform_1(%arg0: i32) -> (i32, i32) {
    %c0_i32 = arith.constant 0 : i32
    %c0_i32_0 = arith.constant 0 : i32
    return %c0_i32, %arg0 : i32, i32
  }
  func.func @transform_2(%arg0: i32) -> (i32, i32) {
    %c0_i32 = arith.constant 0 : i32
    %c0_i32_0 = arith.constant 0 : i32
    return %c0_i32, %arg0 : i32, i32
  }
  func.func @transform_3(%arg0: i32) -> (i32, i32) {
    %c0_i32 = arith.constant 0 : i32
    %c0_i32_0 = arith.constant 0 : i32
    %c0_i32_1 = arith.constant 0 : i32
    return %c0_i32, %c0_i32_0 : i32, i32
  }
  func.func @transform_4(%arg0: i32) -> (i32, i32) {
    %c0_i32 = arith.constant 0 : i32
    %c0_i32_0 = arith.constant 0 : i32
    %c0_i32_1 = arith.constant 0 : i32
    return %c0_i32, %c0_i32_0 : i32, i32
  }
  func.func @transform_5(%arg0: i32) -> (i32, i32) {
    %c0_i32 = arith.constant 0 : i32
    %c0_i32_0 = arith.constant 0 : i32
    %c0_i32_1 = arith.constant 0 : i32
    return %c0_i32, %c0_i32_0 : i32, i32
  }
  func.func @transform_6(%arg0: i32) -> (i32, i32) {
    %c0_i32 = arith.constant 0 : i32
    %c0_i32_0 = arith.constant 0 : i32
    %c0_i32_1 = arith.constant 0 : i32
    return %c0_i32, %c0_i32_0 : i32, i32
  }
  func.func @transform_7(%arg0: i32) -> (i32, i32) {
    %c0_i32 = arith.constant 0 : i32
    %c0_i32_0 = arith.constant 0 : i32
    %c0_i32_1 = arith.constant 0 : i32
    return %c0_i32, %c0_i32_0 : i32, i32
  }
  func.func @transform_8(%arg0: i32) -> (i32, i32) {
    %c0_i32 = arith.constant 0 : i32
    %c0_i32_0 = arith.constant 0 : i32
    %c0_i32_1 = arith.constant 0 : i32
    return %c0_i32, %c0_i32_0 : i32, i32
  }
  func.func @transform_9(%arg0: i32) -> (i32, i32) {
    %c0_i32 = arith.constant 0 : i32
    %c0_i32_0 = arith.constant 0 : i32
    %c0_i32_1 = arith.constant 0 : i32
    return %c0_i32, %c0_i32_0 : i32, i32
  }
  func.func @transform_10(%arg0: i32) -> (i32, i32) {
    %c0_i32 = arith.constant 0 : i32
    %c0_i32_0 = arith.constant 0 : i32
    %c0_i32_1 = arith.constant 0 : i32
    return %c0_i32, %c0_i32_0 : i32, i32
  }
  func.func @transform_11(%arg0: i32) -> (i32, i32) {
    %c0_i32 = arith.constant 0 : i32
    %c0_i32_0 = arith.constant 0 : i32
    %c0_i32_1 = arith.constant 0 : i32
    return %c0_i32, %c0_i32_0 : i32, i32
  }
  func.func @transform_12(%arg0: i32) -> (i32, i32) {
    %c0_i32 = arith.constant 0 : i32
    %c0_i32_0 = arith.constant 0 : i32
    return %c0_i32, %arg0 : i32, i32
  }
}

</mosaic_0001>

<bundles_post_ra>
// kernel: gnn_layer_pallas.1
= control target key start
LH: loop header
LB: loop body
LE: loop exit
PB: predicated region body
PF: predicated region fallthrough
CT: control target
= control target key end

     0   :  { %s2282_s21 = smov 0   ;;  %s2284_s22 = smov 0   ;;  %s2902_s0 = inlined_call_operand.vmem [shape: bf16[32,1024], index: 0, kind: input, shape index: {}]   ;;  %s2903_s1 = inlined_call_operand.vmem [shape: s32[1,1024], index: 1, kind: input, shape index: {}]   ;;  %s2904_s2 = inlined_call_operand.vmem [shape: s32[1,1024], index: 2, kind: input, shape index: {}]   ;;  %s2905_s3 = inlined_call_operand.vmem [shape: bf16[32,128], index: 3, kind: input, shape index: {}]   ;;  %s2906_s4 = inlined_call_operand.vmem [shape: bf16[32,32], index: 4, kind: input, shape index: {}]   ;;  %s2907_s5 = inlined_call_operand.vmem [shape: bf16[32,32], index: 5, kind: input, shape index: {}]   ;;  %s2908_s6 = inlined_call_operand.vmem [shape: f32[32,1], index: 6, kind: input, shape index: {}]   ;;  %s2909_s7 = inlined_call_operand.vmem [shape: f32[64,16], index: 7, kind: input, shape index: {}]   ;;  %s2910_s8 = inlined_call_operand.vmem [shape: bf16[32,16], index: 8, kind: input, shape index: {}]   ;;  %s2911_s9 = inlined_call_operand.vmem [shape: bf16[16,16], index: 9, kind: input, shape index: {}]   ;;  %s2912_s10 = inlined_call_operand.vmem [shape: f32[1,16], index: 10, kind: input, shape index: {}]   ;;  %s2913_s11 = inlined_call_operand.vmem [shape: f32[64,16], index: 11, kind: output, shape index: {0}]   ;;  %s2914_s12 = inlined_call_operand.vmem [shape: f32[32,1024], index: 12, kind: output, shape index: {1}]  }
   0x1   :  { %s2286_s23 = smov 0  }
   0x2 LB: > { %s2298_s24 = sadd.s32 4294967295, %s2212_s23   ;;  %s2301_s25 = sadd.s32 1, %s2212_s23   ;;  %s2212_s23 = sphi %s2286_s23, %s2943_s23   ;;  %s2208_s22 = sphi %s2284_s22, %s2942_s22   ;;  %s2204_s21 = sphi %s2282_s21, %s2941_s21  }
   0x3   : > { %s27_s26 = ssub.s32 %s2212_s23, %s2301_s25  ;;  %s30_s27 = sadd.s32 1, %s2208_s22 }
   0x4   : > { %p28_p0 = scmp.eq.s32.totalorder %s27_s26, 0  ;;  %p37_p1 = scmp.ne.s32.totalorder %s2208_s22, %s2204_s21 }
   0x5   : > { %p38_p2 = scmp.eq.s32.totalorder %s2212_s23, 0  ;;  %p308_p3 = scmp.eq.s32.totalorder %s2298_s24, 1 }
   0x6   : > { %s2311_s28 = scalar_select %p28_p0, %s2208_s22, %s30_s27  }
   0x7   : > { %p39_p4 = por %p38_p2, %p37_p1  ;;  %p2313_p5 = por %p308_p3, %p37_p1 }
   0x8   : > { %p1838_p6 = scmp.ge.s32.totalorder %s2212_s23, 2 }
   0xa   : > { %354 = sbr.rel (%p1838_p6) target bundleno = 27 (0x1b), region = 48 }
   0xf   : > { %357 = sbr.rel (!%p39_p4) target bundleno = 27 (0x1b), region = 52  ;;  %s359_s30 = sand.u32 (%p39_p4), 1, %s2208_s22  }
  0x10   : > { %s2138_s13 = sshll.u32 (%p39_p4), %s2212_s23, 4  ;;  %s1839_s14 = sshll.u32 (%p39_p4), %s359_s30, 6 }
  0x11   : > { %s364_s17 = scalar_lea.vmem (%p39_p4), %s2902_s0, %s2138_s13  ;;  %s361_s18 = scalar_lea.vmem (%p39_p4), [#allocation3], %s1839_s14 }
  0x12   : > { %v377_v0 = vld [vmem:[%s364_s17] sm:$0xff] (%p39_p4)  ;;  %v379_v1 = vld [vmem:[%s364_s17 + $0x8] sm:$0xff] (%p39_p4) }
  0x13   : > { %v381_v2 = vld [vmem:[%s364_s17 + $0x20] sm:$0xff] (%p39_p4)  ;;  %378 = vst [vmem:[%s361_s18] sm:$0xff] (%p39_p4), %v377_v0  ;;  %v383_v3 = vld [vmem:[%s364_s17 + $0x28] sm:$0xff] (%p39_p4) }
  0x14   : > { %380 = vst [vmem:[%s361_s18 + $0x8] sm:$0xff] %v379_v1  ;;  %v385_v4 = vld [vmem:[%s364_s17 + $0x40] sm:$0xff]  ;;  %v387_v5 = vld [vmem:[%s364_s17 + $0x48] sm:$0xff] }
  0x15   : > { %382 = vst [vmem:[%s361_s18 + $0x10] sm:$0xff] %v381_v2  ;;  %v389_v6 = vld [vmem:[%s364_s17 + $0x60] sm:$0xff]  ;;  %v391_v7 = vld [vmem:[%s364_s17 + $0x68] sm:$0xff] }
  0x16   : > { %384 = vst [vmem:[%s361_s18 + $0x18] sm:$0xff] %v383_v3 }
  0x17   : > { %386 = vst [vmem:[%s361_s18 + $0x20] sm:$0xff] %v385_v4 }
  0x18   : > { %388 = vst [vmem:[%s361_s18 + $0x28] sm:$0xff] %v387_v5 }
  0x19   : > { %390 = vst [vmem:[%s361_s18 + $0x30] sm:$0xff] %v389_v6 }
  0x1a   : > { %392 = vst [vmem:[%s361_s18 + $0x38] sm:$0xff] %v391_v7 }
  0x1b PF: > { %p1842_p7 = scmp.ge.s32.totalorder %s2212_s23, 1  ;;  %p413_p8 = scmp.lt.s32.totalorder %s2212_s23, 3 }
  0x1d   : > { %p414_p9 = pnand %p1842_p7, %p413_p8 }
  0x1e   : > { %s420_s19 = sand.u32 (!%p414_p9), 1, %s2204_s21   ;;  %s1845_s20 = sshll.u32 (!%p414_p9), %s2298_s24, 2 }
  0x1f   : > { %417 = sbr.rel (%p414_p9) target bundleno = 1059 (0x423), region = 83  ;;  %s1843_s26 = sshll.u32 (!%p414_p9), %s420_s19, 6 }
  0x20   : > { %s1844_s27 = sshll.u32 (!%p414_p9), %s420_s19, 7  ;;  %p470_p10 = scmp.lt.s32.totalorder (!%p414_p9), %s1845_s20, 7 }
  0x21   : > { %s2337_s17 = scalar_lea.vmem (!%p414_p9), [#allocation3], %s1843_s26  ;;  %s2339_s18 = scalar_lea.vmem (!%p414_p9), [#allocation4], %s1844_s27 }
  0x22   : > { %p1847_p11 = scmp.ne.s32.totalorder (!%p414_p9), %s2298_s24, 0 }
  0x24   : > { %s2945_s20 = smov (!%p470_p10, %s1845_s20), 7  ;;  %484 = sbr.rel (%p1847_p11) target bundleno = 50 (0x32), region = 91 }
  0x25   : > { %s472_s14 = scalar_lea.vmem %s2903_s1, %s2945_s20  ;;  %s477_s23 = scalar_lea.vmem %s2904_s2, %s2945_s20 }
  0x29   : > { %vm485_vm0 = vcmask 261120   ;;  %v2214_v8 = vmov 0.0  }
  0x2a   : > { %486 = vst.msk [vmem:[#allocation2] sm:$0xff] %vm485_vm0, %v2214_v8 }
  0x2b   : > { %487 = vst.msk [vmem:[#allocation2 + $0x8] sm:$0xff] %vm485_vm0, %v2214_v8 }
  0x2c   : > { %488 = vst.msk [vmem:[#allocation2 + $0x10] sm:$0xff] %vm485_vm0, %v2214_v8 }
  0x2d   : > { %489 = vst.msk [vmem:[#allocation2 + $0x18] sm:$0xff] %vm485_vm0, %v2214_v8 }
  0x2e   : > { %490 = vst.msk [vmem:[#allocation2 + $0x20] sm:$0xff] %vm485_vm0, %v2214_v8 }
  0x2f   : > { %491 = vst.msk [vmem:[#allocation2 + $0x28] sm:$0xff] %vm485_vm0, %v2214_v8 }
  0x30   : > { %492 = vst.msk [vmem:[#allocation2 + $0x30] sm:$0xff] %vm485_vm0, %v2214_v8 }
  0x31   : > { %493 = vst.msk [vmem:[#allocation2 + $0x38] sm:$0xff] %vm485_vm0, %v2214_v8 }
  0x32 PF: > { %v1970_v9 = vld [vmem:[%s2337_s17 + $0x20] sm:$0xf]  ;;  %v2149_v10 = vld [vmem:[%s2337_s17 + $0x2c] sm:$0xf0]  ;;  %v2147_v11 = vld [vmem:[%s2337_s17 + $0x24] sm:$0xf]  ;;  %v496_v21 = vlaneseq }
  0x33   : > { %v1971_v12 = vor.u32 %v2149_v10, %v1970_v9  ;;  %v1972_v13 = vld [vmem:[%s2337_s17 + $0x30] sm:$0xf0]  ;;  %v1978_v14 = vld [vmem:[%s2337_s17 + $0x28] sm:$0xf]  ;;  %v2150_v15 = vld [vmem:[%s2337_s17 + $0x34] sm:$0xf0] }
  0x34   : > { %v1975_v16 = vor.u32 %v2147_v11, %v1972_v13  ;;  %v1979_v17 = vor.u32 %v2150_v15, %v1978_v14  ;;  %v2148_v18 = vld [vmem:[%s2337_s17 + $0x2c] sm:$0xf]  ;;  %v1980_v19 = vld [vmem:[%s2337_s17 + $0x38] sm:$0xf0]  ;;  %v1954_v20 = vld [vmem:[%s2337_s17] sm:$0xf] }
  0x35   : > { %1069 = vmatpush.bf16.msra.mxu0 %v1971_v12  ;;  %v1983_v22 = vor.u32 %v2148_v18, %v1980_v19  ;;  %v2145_v23 = vld [vmem:[%s2337_s17 + $0xc] sm:$0xf0]  ;;  %v2143_v24 = vld [vmem:[%s2337_s17 + $0x4] sm:$0xf]  ;;  %v1956_v25 = vld [vmem:[%s2337_s17 + $0x10] sm:$0xf0] }
  0x36   : > { %1088 = vmatpush.bf16.msra.mxu1 %v1975_v16  ;;  %1107 = vmatpush.bf16.msra.mxu2 %v1979_v17  ;;  %v1955_v26 = vor.u32 %v2145_v23, %v1954_v20  ;;  %v1959_v27 = vor.u32 %v2143_v24, %v1956_v25  ;;  %v1962_v28 = vld [vmem:[%s2337_s17 + $0x8] sm:$0xf]  ;;  %v2146_v29 = vld [vmem:[%s2337_s17 + $0x14] sm:$0xf0]  ;;  %v2144_v30 = vld [vmem:[%s2337_s17 + $0xc] sm:$0xf] }
  0x37   : > { %1126 = vmatpush.bf16.msra.mxu3 %v1983_v22  ;;  %v1963_v31 = vor.u32 %v2146_v29, %v1962_v28  ;;  %v1964_v32 = vld [vmem:[%s2337_s17 + $0x18] sm:$0xf0]  ;;  %v494_v33 = vld [vmem:[%s472_s14] sm:$0xf]  ;;  %v2373_v37 = vshrl.u32 %v496_v21, 7  ;;  %vm2915_vm1 = vcmask 261120  }
  0x38   : > { %v1967_v34 = vor.u32 %v2144_v30, %v1964_v32  ;;  %v2141_v35 = vld [vmem:[%s2906_s4] sm:$0xff]  ;;  %v2375_v38 = vperm.slane %v494_v33, 0  ;;  %v2380_v42 = vperm.slane %v494_v33, 1  ;;  %v2393_v45 = vperm.slane %v494_v33, 2  ;;  %v2142_v52 = vld [vmem:[%s2906_s4 + $0x8] sm:$0xff]  ;;  %p2112_p12 = scmp.ne.s32.totalorder %s2298_s24, 1 }
  0x39   : > { %v2371_v36 = vld [vmem:[%s477_s23] sm:$0xf]  ;;  %1070 = vmatpush.bf16.msra.mxu0 %v1955_v26  ;;  %v511_v40 = vadd.s32 112, %v2373_v37  ;;  %v512_v41 = vadd.s32 120, %v2373_v37  ;;  %v2402_v47 = vperm.slane %v494_v33, 3  ;;  %v509_v50 = vadd.s32 96, %v2373_v37 }
  0x3a   : > { %v581_v39 = vadd.s32 64, %v2371_v36  ;;  %1089 = vmatpush.bf16.msra.mxu1 %v1959_v27  ;;  %1108 = vmatpush.bf16.msra.mxu2 %v1963_v31  ;;  %v2215_v49 = vmov 1.0|1.0   ;;  %v510_v51 = vadd.s32 104, %v2373_v37  ;;  %v507_v53 = vadd.s32 80, %v2373_v37  ;;  %v2139_v0 = vld [vmem:[%s2905_s3] sm:$0xff] }
  0x3b   : > { %1127 = vmatpush.bf16.msra.mxu3 %v1967_v34  ;;  %vm573_vm2 = vcmp.eq.s32.totalorder %v511_v40, %v2375_v38  ;;  %vm577_vm3 = vcmp.eq.s32.totalorder %v512_v41, %v2375_v38  ;;  %vm574_vm7 = vcmp.eq.s32.totalorder %v511_v40, %v2380_v42  ;;  %vm578_vm10 = vcmp.eq.s32.totalorder %v512_v41, %v2380_v42  ;;  %v2140_v1 = vld [vmem:[%s2905_s3 + $0x8] sm:$0xff] }
  0x3c   : > { %v2382_v43 = vperm.slane %v581_v39, 0  ;;  %v2384_v44 = vperm.slane %v581_v39, 1  ;;  %1984 = vmatmul.msk.bf16.vlgmr.msra.gmra.mxu0 %vm2915_vm1, %v2141_v35  ;;  %v2395_v46 = vperm.slane %v581_v39, 2  ;;  %v2404_v48 = vperm.slane %v581_v39, 3 }
  0x3d   : > { %1986 = vmatmul.msk.bf16.vlgmr.msra.gmra.mxu1 %vm2915_vm1, %v2141_v35  ;;  %1988 = vmatmul.msk.bf16.vlgmr.msra.gmra.mxu2 %vm2915_vm1, %v2141_v35  ;;  %vm575_vm14 = vcmp.eq.s32.totalorder %v511_v40, %v2393_v45  ;;  %v508_v54 = vadd.s32 88, %v2373_v37  ;;  %v505_v55 = vadd.s32 64, %v2373_v37  ;;  %v506_v56 = vadd.s32 72, %v2373_v37 }
  0x3e   : > { %vm642_vm4 = vcmp.eq.s32.totalorder %v511_v40, %v2382_v43  ;;  %vm646_vm5 = vcmp.eq.s32.totalorder %v512_v41, %v2382_v43  ;;  %1990 = vmatmul.msk.bf16.vlgmr.msra.gmra.mxu3 %vm2915_vm1, %v2141_v35  ;;  %vm643_vm8 = vcmp.eq.s32.totalorder %v511_v40, %v2384_v44  ;;  %vm647_vm11 = vcmp.eq.s32.totalorder %v512_v41, %v2384_v44 }
  0x3f   : > { %vm706_vm6 = vmor %vm573_vm2, %vm642_vm4  ;;  %vm644_vm15 = vcmp.eq.s32.totalorder %v511_v40, %v2395_v46  ;;  %vm579_vm2 = vcmp.eq.s32.totalorder %v512_v41, %v2393_v45  ;;  %v2485_v57 = vadd.s32 48, %v2373_v37  ;;  %v2491_v58 = vadd.s32 56, %v2373_v37 }
  0x40   : > { %vm710_vm9 = vmor %vm577_vm3, %vm646_vm5  ;;  %vm648_vm3 = vcmp.eq.s32.totalorder %v512_v41, %v2395_v46  ;;  %v2523_v59 = vadd.s32 32, %v2373_v37  ;;  %v2531_v60 = vadd.s32 40, %v2373_v37  ;;  %v2565_v61 = vadd.s32 16, %v2373_v37 }
  0x41   : > { %vm2000_vm12 = vmpackc.low %vm710_vm9, %vm706_vm6  ;;  %vm576_vm6 = vcmp.eq.s32.totalorder %v511_v40, %v2402_v47  ;;  %vm645_vm9 = vcmp.eq.s32.totalorder %v511_v40, %v2404_v48  ;;  %v2573_v62 = vadd.s32 24, %v2373_v37  ;;  %v2612_v63 = vadd.s32 8, %v2373_v37 }
  0x42   : > { %2001 = vmatpush.bf16.msk.msrb.mxu0 %vm2000_vm12, %v2215_v49  ;;  %vm707_vm13 = vmor %vm574_vm7, %vm643_vm8  ;;  %vm580_vm8 = vcmp.eq.s32.totalorder %v512_v41, %v2402_v47  ;;  %v2216_v33 = vmov 0  }
  0x43   : > { %vm711_vm0 = vmor %vm578_vm10, %vm647_vm11  ;;  %vm649_vm10 = vcmp.eq.s32.totalorder %v512_v41, %v2404_v48  ;;  %2188 = vset.pattern.permute.xlu1 %v2216_v33  ;;  %2187 = vset.pattern.permute.xlu0 %v2216_v33 }
  0x44   : > { %vm2016_vm4 = vmpackc.low %vm711_vm0, %vm707_vm13  ;;  %vm565_vm13 = vcmp.eq.s32.totalorder %v509_v50, %v2375_v38  ;;  %vm634_vm0 = vcmp.eq.s32.totalorder %v509_v50, %v2382_v43 }
  0x45   : > { %2017 = vmatpush.bf16.msk.msrb.mxu1 %vm2016_vm4, %v2215_v49  ;;  %vm708_vm5 = vmor %vm575_vm14, %vm644_vm15  ;;  %vm569_vm15 = vcmp.eq.s32.totalorder %v510_v51, %v2375_v38  ;;  %vm638_vm4 = vcmp.eq.s32.totalorder %v510_v51, %v2382_v43 }
  0x46   : > { %vm712_vm7 = vmor %vm579_vm2, %vm648_vm3  ;;  %vm566_vm3 = vcmp.eq.s32.totalorder %v509_v50, %v2380_v42 }
  0x47   : > { %vm2032_vm11 = vmpackc.low %vm712_vm7, %vm708_vm5  ;;  %vm635_vm5 = vcmp.eq.s32.totalorder %v509_v50, %v2384_v44 }
  0x48   : > { %2033 = vmatpush.bf16.msk.msrb.mxu2 %vm2032_vm11, %v2215_v49  ;;  %vm709_vm12 = vmor %vm576_vm6, %vm645_vm9  ;;  %vm570_vm6 = vcmp.eq.s32.totalorder %v510_v51, %v2380_v42  ;;  %vm639_vm9 = vcmp.eq.s32.totalorder %v510_v51, %v2384_v44 }
  0x49   : > { %vm713_vm14 = vmor %vm580_vm8, %vm649_vm10  ;;  %vm567_vm10 = vcmp.eq.s32.totalorder %v509_v50, %v2393_v45 }
  0x4a   : > { %vm2048_vm1 = vmpackc.low %vm713_vm14, %vm709_vm12  ;;  %vm636_vm12 = vcmp.eq.s32.totalorder %v509_v50, %v2395_v46 }
  0x4b   : > { %2049 = vmatpush.bf16.msk.msrb.mxu3 %vm2048_vm1, %v2215_v49  ;;  %vm698_vm2 = vmor %vm565_vm13, %vm634_vm0  ;;  %vm571_vm1 = vcmp.eq.s32.totalorder %v510_v51, %v2393_v45  ;;  %vm640_vm13 = vcmp.eq.s32.totalorder %v510_v51, %v2395_v46 }
  0x4c   : > { %vm702_vm7 = vmor %vm569_vm15, %vm638_vm4  ;;  %vm568_vm4 = vcmp.eq.s32.totalorder %v509_v50, %v2402_v47 }
  0x4d   : > { %vm2002_vm11 = vmpackc.low %vm702_vm7, %vm698_vm2  ;;  %vm637_vm2 = vcmp.eq.s32.totalorder %v509_v50, %v2404_v48  ;;  %vm572_vm7 = vcmp.eq.s32.totalorder %v510_v51, %v2402_v47 }
  0x4e   : > { %2003 = vmatpush.bf16.msk.msrb.mxu0 %vm2002_vm11, %v2215_v49  ;;  %vm699_vm8 = vmor %vm566_vm3, %vm635_vm5  ;;  %vm2917_vm3 = vcmask 261120  }
  0x4f   : > { %vm703_vm14 = vmor %vm570_vm6, %vm639_vm9  ;;  %1985 = vmatmul.msk.bf16.gmra.mxu0 %vm2917_vm3, %v2142_v52  ;;  %vm641_vm6 = vcmp.eq.s32.totalorder %v510_v51, %v2404_v48 }
  0x50   : > { %vm2018_vm0 = vmpackc.low %vm703_vm14, %vm699_vm8 }
  0x51   : > { %2019 = vmatpush.bf16.msk.msrb.mxu1 %vm2018_vm0, %v2215_v49  ;;  %vm700_vm15 = vmor %vm567_vm10, %vm636_vm12  ;;  %vm557_vm12 = vcmp.eq.s32.totalorder %v507_v53, %v2375_v38  ;;  %vm626_vm0 = vcmp.eq.s32.totalorder %v507_v53, %v2382_v43 }
  0x52   : > { %vm704_vm5 = vmor %vm571_vm1, %vm640_vm13  ;;  %vm561_vm1 = vcmp.eq.s32.totalorder %v508_v54, %v2375_v38  ;;  %vm630_vm13 = vcmp.eq.s32.totalorder %v508_v54, %v2382_v43 }
  0x53   : > { %vm2918_vm9 = vmmov %vm2917_vm3 }
  0x54   : > { %1987 = vmatmul.msk.bf16.gmra.mxu1 %vm2918_vm9, %v2142_v52  ;;  %vm2919_vm11 = vmmov %vm2917_vm3 }
  0x55   : > { %1989 = vmatmul.msk.bf16.gmra.mxu2 %vm2919_vm11, %v2142_v52  ;;  %vm2034_vm8 = vmpackc.low %vm704_vm5, %vm700_vm15  ;;  %vm558_vm15 = vcmp.eq.s32.totalorder %v507_v53, %v2380_v42  ;;  %vm627_vm5 = vcmp.eq.s32.totalorder %v507_v53, %v2384_v44 }
  0x56   : > { %vm2920_vm14 = vmmov %vm2917_vm3  ;;  %2035 = vmatpush.bf16.msk.msrb.mxu2 %vm2034_vm8, %v2215_v49 }
  0x57   : > { %1991 = vmatmul.msk.bf16.gmra.mxu3 %vm2920_vm14, %v2142_v52  ;;  %vm701_vm10 = vmor %vm568_vm4, %vm637_vm2  ;;  %vm562_vm4 = vcmp.eq.s32.totalorder %v508_v54, %v2380_v42  ;;  %vm631_vm2 = vcmp.eq.s32.totalorder %v508_v54, %v2384_v44 }
  0x58   : > { %vm705_vm3 = vmor %vm572_vm7, %vm641_vm6  ;;  %vm559_vm6 = vcmp.eq.s32.totalorder %v507_v53, %v2393_v45 }
  0x59   : > { %vm2050_vm9 = vmpackc.low %vm705_vm3, %vm701_vm10  ;;  %vm628_vm10 = vcmp.eq.s32.totalorder %v507_v53, %v2395_v46 }
  0x5a   : > { %2051 = vmatpush.bf16.msk.msrb.mxu3 %vm2050_vm9, %v2215_v49  ;;  %vm690_vm11 = vmor %vm557_vm12, %vm626_vm0  ;;  %vm563_vm12 = vcmp.eq.s32.totalorder %v508_v54, %v2393_v45  ;;  %vm632_vm0 = vcmp.eq.s32.totalorder %v508_v54, %v2395_v46 }
  0x5b   : > { %vm694_vm14 = vmor %vm561_vm1, %vm630_vm13  ;;  %vm560_vm13 = vcmp.eq.s32.totalorder %v507_v53, %v2402_v47 }
  0x5c   : > { %vm2004_vm8 = vmpackc.low %vm694_vm14, %vm690_vm11  ;;  %vm629_vm11 = vcmp.eq.s32.totalorder %v507_v53, %v2404_v48  ;;  %vm633_vm14 = vcmp.eq.s32.totalorder %v508_v54, %v2404_v48 }
  0x5d   : > { %2005 = vmatpush.bf16.msk.msrb.mxu0 %vm2004_vm8, %v2215_v49  ;;  %vm691_vm7 = vmor %vm558_vm15, %vm627_vm5  ;;  %vm564_vm5 = vcmp.eq.s32.totalorder %v508_v54, %v2402_v47  ;;  %vm549_vm8 = vcmp.eq.s32.totalorder %v505_v55, %v2375_v38  ;;  %v1255_v54 = vld [vmem:[%s2908_s6] sm:$0xff] }
  0x5e   : > { %vm695_vm3 = vmor %vm562_vm4, %vm631_vm2  ;;  %1261 = vperm.xlu1 %2188, %v1255_v54  }
  0x5f   : > { %vm2020_vm9 = vmpackc.low %vm695_vm3, %vm691_vm7  ;;  %vm618_vm7 = vcmp.eq.s32.totalorder %v505_v55, %v2382_v43  ;;  %vm622_vm3 = vcmp.eq.s32.totalorder %v506_v56, %v2382_v43 }
  0x60   : > { %2021 = vmatpush.bf16.msk.msrb.mxu1 %vm2020_vm9, %v2215_v49  ;;  %vm692_vm1 = vmor %vm559_vm6, %vm628_vm10  ;;  %vm553_vm10 = vcmp.eq.s32.totalorder %v506_v56, %v2375_v38 }
  0x61   : > { %vm696_vm15 = vmor %vm563_vm12, %vm632_vm0  ;;  %vm550_vm0 = vcmp.eq.s32.totalorder %v505_v55, %v2380_v42 }
  0x62   : > { %vm2036_vm4 = vmpackc.low %vm696_vm15, %vm692_vm1  ;;  %vm619_vm1 = vcmp.eq.s32.totalorder %v505_v55, %v2384_v44 }
  0x63   : > { %2037 = vmatpush.bf16.msk.msrb.mxu2 %vm2036_vm4, %v2215_v49  ;;  %vm693_vm2 = vmor %vm560_vm13, %vm629_vm11  ;;  %vm554_vm13 = vcmp.eq.s32.totalorder %v506_v56, %v2380_v42  ;;  %vm623_vm11 = vcmp.eq.s32.totalorder %v506_v56, %v2384_v44 }
  0x64   : > { %vm697_vm6 = vmor %vm564_vm5, %vm633_vm14  ;;  %vm551_vm14 = vcmp.eq.s32.totalorder %v505_v55, %v2393_v45 }
  0x65   : > { %vm2052_vm9 = vmpackc.low %vm697_vm6, %vm693_vm2  ;;  %vm620_vm2 = vcmp.eq.s32.totalorder %v505_v55, %v2395_v46 }
  0x66   : > { %2053 = vmatpush.bf16.msk.msrb.mxu3 %vm2052_vm9, %v2215_v49  ;;  %vm682_vm12 = vmor %vm549_vm8, %vm618_vm7  ;;  %vm555_vm8 = vcmp.eq.s32.totalorder %v506_v56, %v2393_v45  ;;  %vm624_vm7 = vcmp.eq.s32.totalorder %v506_v56, %v2395_v46 }
  0x67   : > { %vm686_vm15 = vmor %vm553_vm10, %vm622_vm3  ;;  %vm552_vm3 = vcmp.eq.s32.totalorder %v505_v55, %v2402_v47 }
  0x68   : > { %vm2006_vm4 = vmpackc.low %vm686_vm15, %vm682_vm12  ;;  %vm621_vm12 = vcmp.eq.s32.totalorder %v505_v55, %v2404_v48  ;;  %vm625_vm15 = vcmp.eq.s32.totalorder %v506_v56, %v2404_v48 }
  0x69   : > { %2007 = vmatpush.bf16.msk.msrb.mxu0 %vm2006_vm4, %v2215_v49  ;;  %vm683_vm5 = vmor %vm550_vm0, %vm619_vm1  ;;  %vm556_vm1 = vcmp.eq.s32.totalorder %v506_v56, %v2402_v47  ;;  %vm541_vm4 = vcmp.eq.s32.totalorder %v2485_v57, %v2375_v38  ;;  %v2151_v56 = vld [vmem:[%s2907_s5] sm:$0xff] }
  0x6a   : > { %vm687_vm6 = vmor %vm554_vm13, %vm623_vm11 }
  0x6b   : > { %vm2022_vm9 = vmpackc.low %vm687_vm6, %vm683_vm5  ;;  %vm610_vm5 = vcmp.eq.s32.totalorder %v2485_v57, %v2382_v43  ;;  %vm614_vm6 = vcmp.eq.s32.totalorder %v2491_v58, %v2382_v43 }
  0x6c   : > { %2023 = vmatpush.bf16.msk.msrb.mxu1 %vm2022_vm9, %v2215_v49  ;;  %vm684_vm10 = vmor %vm551_vm14, %vm620_vm2  ;;  %vm545_vm2 = vcmp.eq.s32.totalorder %v2491_v58, %v2375_v38  ;;  %vm542_vm9 = vcmp.eq.s32.totalorder %v2485_v57, %v2380_v42 }
  0x6d   : > { %vm688_vm0 = vmor %vm555_vm8, %vm624_vm7 }
  0x6e   : > { %vm2038_vm13 = vmpackc.low %vm688_vm0, %vm684_vm10  ;;  %vm611_vm10 = vcmp.eq.s32.totalorder %v2485_v57, %v2384_v44  ;;  %vm615_vm0 = vcmp.eq.s32.totalorder %v2491_v58, %v2384_v44 }
  0x6f   : > { %2039 = vmatpush.bf16.msk.msrb.mxu2 %vm2038_vm13, %v2215_v49  ;;  %vm685_vm11 = vmor %vm552_vm3, %vm621_vm12  ;;  %vm546_vm12 = vcmp.eq.s32.totalorder %v2491_v58, %v2380_v42  ;;  %vm543_vm13 = vcmp.eq.s32.totalorder %v2485_v57, %v2393_v45 }
  0x70   : > { %vm689_vm14 = vmor %vm556_vm1, %vm625_vm15 }
  0x71   : > { %vm2054_vm8 = vmpackc.low %vm689_vm14, %vm685_vm11  ;;  %vm612_vm11 = vcmp.eq.s32.totalorder %v2485_v57, %v2395_v46  ;;  %vm616_vm14 = vcmp.eq.s32.totalorder %v2491_v58, %v2395_v46 }
  0x72   : > { %2055 = vmatpush.bf16.msk.msrb.mxu3 %vm2054_vm8, %v2215_v49  ;;  %vm674_vm7 = vmor %vm541_vm4, %vm610_vm5  ;;  %vm547_vm5 = vcmp.eq.s32.totalorder %v2491_v58, %v2393_v45  ;;  %vm544_vm8 = vcmp.eq.s32.totalorder %v2485_v57, %v2402_v47 }
  0x73   : > { %vm678_vm3 = vmor %vm545_vm2, %vm614_vm6 }
  0x74   : > { %vm2008_vm1 = vmpackc.low %vm678_vm3, %vm674_vm7  ;;  %vm613_vm7 = vcmp.eq.s32.totalorder %v2485_v57, %v2404_v48  ;;  %vm617_vm3 = vcmp.eq.s32.totalorder %v2491_v58, %v2404_v48 }
  0x75   : > { %2009 = vmatpush.bf16.msk.msrb.mxu0 %vm2008_vm1, %v2215_v49  ;;  %vm675_vm15 = vmor %vm542_vm9, %vm611_vm10  ;;  %vm548_vm10 = vcmp.eq.s32.totalorder %v2491_v58, %v2402_v47  ;;  %vm533_vm1 = vcmp.eq.s32.totalorder %v2523_v59, %v2375_v38 }
  0x76   : > { %vm679_vm4 = vmor %vm546_vm12, %vm615_vm0 }
  0x77   : > { %vm2024_vm2 = vmpackc.low %vm679_vm4, %vm675_vm15  ;;  %vm602_vm15 = vcmp.eq.s32.totalorder %v2523_v59, %v2382_v43  ;;  %vm606_vm4 = vcmp.eq.s32.totalorder %v2531_v60, %v2382_v43 }
  0x78   : > { %2025 = vmatpush.bf16.msk.msrb.mxu1 %vm2024_vm2, %v2215_v49  ;;  %vm676_vm6 = vmor %vm543_vm13, %vm612_vm11  ;;  %vm537_vm11 = vcmp.eq.s32.totalorder %v2531_v60, %v2375_v38  ;;  %vm534_vm2 = vcmp.eq.s32.totalorder %v2523_v59, %v2380_v42 }
  0x79   : > { %vm680_vm9 = vmor %vm547_vm5, %vm616_vm14 }
  0x7a   : > { %vm2040_vm12 = vmpackc.low %vm680_vm9, %vm676_vm6  ;;  %vm603_vm6 = vcmp.eq.s32.totalorder %v2523_v59, %v2384_v44  ;;  %vm607_vm9 = vcmp.eq.s32.totalorder %v2531_v60, %v2384_v44 }
  0x7b   : > { %2041 = vmatpush.bf16.msk.msrb.mxu2 %vm2040_vm12, %v2215_v49  ;;  %vm677_vm0 = vmor %vm544_vm8, %vm613_vm7  ;;  %vm538_vm7 = vcmp.eq.s32.totalorder %v2531_v60, %v2380_v42  ;;  %vm535_vm12 = vcmp.eq.s32.totalorder %v2523_v59, %v2393_v45 }
  0x7c   : > { %vm681_vm13 = vmor %vm548_vm10, %vm617_vm3 }
  0x7d   : > { %vm2056_vm5 = vmpackc.low %vm681_vm13, %vm677_vm0  ;;  %vm604_vm0 = vcmp.eq.s32.totalorder %v2523_v59, %v2395_v46  ;;  %vm608_vm13 = vcmp.eq.s32.totalorder %v2531_v60, %v2395_v46 }
  0x7e   : > { %2057 = vmatpush.bf16.msk.msrb.mxu3 %vm2056_vm5, %v2215_v49  ;;  %vm666_vm14 = vmor %vm533_vm1, %vm602_vm15  ;;  %vm539_vm15 = vcmp.eq.s32.totalorder %v2531_v60, %v2393_v45  ;;  %vm536_vm5 = vcmp.eq.s32.totalorder %v2523_v59, %v2402_v47 }
  0x7f   : > { %vm670_vm8 = vmor %vm537_vm11, %vm606_vm4 }
  0x80   : > { %vm2010_vm10 = vmpackc.low %vm670_vm8, %vm666_vm14  ;;  %vm605_vm14 = vcmp.eq.s32.totalorder %v2523_v59, %v2404_v48  ;;  %vm609_vm8 = vcmp.eq.s32.totalorder %v2531_v60, %v2404_v48 }
  0x81   : > { %2011 = vmatpush.bf16.msk.msrb.mxu0 %vm2010_vm10, %v2215_v49  ;;  %vm667_vm3 = vmor %vm534_vm2, %vm603_vm6  ;;  %vm540_vm6 = vcmp.eq.s32.totalorder %v2531_v60, %v2402_v47  ;;  %vm525_vm10 = vcmp.eq.s32.totalorder %v2565_v61, %v2375_v38 }
  0x82   : > { %vm671_vm1 = vmor %vm538_vm7, %vm607_vm9 }
  0x83   : > { %vm2026_vm11 = vmpackc.low %vm671_vm1, %vm667_vm3  ;;  %vm594_vm3 = vcmp.eq.s32.totalorder %v2565_v61, %v2382_v43  ;;  %vm598_vm1 = vcmp.eq.s32.totalorder %v2573_v62, %v2382_v43 }
  0x84   : > { %2027 = vmatpush.bf16.msk.msrb.mxu1 %vm2026_vm11, %v2215_v49  ;;  %vm668_vm4 = vmor %vm535_vm12, %vm604_vm0  ;;  %vm529_vm0 = vcmp.eq.s32.totalorder %v2573_v62, %v2375_v38  ;;  %vm526_vm11 = vcmp.eq.s32.totalorder %v2565_v61, %v2380_v42 }
  0x85   : > { %vm672_vm2 = vmor %vm539_vm15, %vm608_vm13 }
  0x86   : > { %vm2042_vm7 = vmpackc.low %vm672_vm2, %vm668_vm4  ;;  %vm595_vm4 = vcmp.eq.s32.totalorder %v2565_v61, %v2384_v44  ;;  %vm599_vm2 = vcmp.eq.s32.totalorder %v2573_v62, %v2384_v44 }
  0x87   : > { %2043 = vmatpush.bf16.msk.msrb.mxu2 %vm2042_vm7, %v2215_v49  ;;  %vm669_vm9 = vmor %vm536_vm5, %vm605_vm14  ;;  %vm530_vm14 = vcmp.eq.s32.totalorder %v2573_v62, %v2380_v42  ;;  %vm527_vm7 = vcmp.eq.s32.totalorder %v2565_v61, %v2393_v45 }
  0x88   : > { %vm673_vm12 = vmor %vm540_vm6, %vm609_vm8 }
  0x89   : > { %vm2058_vm15 = vmpackc.low %vm673_vm12, %vm669_vm9  ;;  %vm596_vm9 = vcmp.eq.s32.totalorder %v2565_v61, %v2395_v46  ;;  %vm600_vm12 = vcmp.eq.s32.totalorder %v2573_v62, %v2395_v46 }
  0x8a   : > { %2059 = vmatpush.bf16.msk.msrb.mxu3 %vm2058_vm15, %v2215_v49  ;;  %vm658_vm13 = vmor %vm525_vm10, %vm594_vm3  ;;  %vm531_vm3 = vcmp.eq.s32.totalorder %v2573_v62, %v2393_v45  ;;  %vm528_vm15 = vcmp.eq.s32.totalorder %v2565_v61, %v2402_v47 }
  0x8b   : > { %vm662_vm5 = vmor %vm529_vm0, %vm598_vm1 }
  0x8c   : > { %vm2012_vm6 = vmpackc.low %vm662_vm5, %vm658_vm13  ;;  %vm597_vm13 = vcmp.eq.s32.totalorder %v2565_v61, %v2404_v48  ;;  %vm601_vm5 = vcmp.eq.s32.totalorder %v2573_v62, %v2404_v48 }
  0x8d   : > { %2013 = vmatpush.bf16.msk.msrb.mxu0 %vm2012_vm6, %v2215_v49  ;;  %vm659_vm8 = vmor %vm526_vm11, %vm595_vm4  ;;  %vm532_vm4 = vcmp.eq.s32.totalorder %v2573_v62, %v2402_v47  ;;  %vm517_vm6 = vcmp.eq.s32.totalorder %v2373_v37, %v2375_v38 }
  0x8e   : > { %vm663_vm10 = vmor %vm530_vm14, %vm599_vm2 }
  0x8f   : > { %vm2028_vm0 = vmpackc.low %vm663_vm10, %vm659_vm8  ;;  %vm586_vm8 = vcmp.eq.s32.totalorder %v2373_v37, %v2382_v43  ;;  %vm590_vm10 = vcmp.eq.s32.totalorder %v2612_v63, %v2382_v43 }
  0x90   : > { %2029 = vmatpush.bf16.msk.msrb.mxu1 %vm2028_vm0, %v2215_v49  ;;  %vm660_vm1 = vmor %vm527_vm7, %vm596_vm9  ;;  %vm521_vm9 = vcmp.eq.s32.totalorder %v2612_v63, %v2375_v38  ;;  %vm518_vm0 = vcmp.eq.s32.totalorder %v2373_v37, %v2380_v42 }
  0x91   : > { %vm664_vm11 = vmor %vm531_vm3, %vm600_vm12 }
  0x92   : > { %vm2044_vm14 = vmpackc.low %vm664_vm11, %vm660_vm1  ;;  %vm587_vm1 = vcmp.eq.s32.totalorder %v2373_v37, %v2384_v44  ;;  %vm591_vm11 = vcmp.eq.s32.totalorder %v2612_v63, %v2384_v44 }
  0x93   : > { %2045 = vmatpush.bf16.msk.msrb.mxu2 %vm2044_vm14, %v2215_v49  ;;  %vm661_vm2 = vmor %vm528_vm15, %vm597_vm13  ;;  %vm522_vm13 = vcmp.eq.s32.totalorder %v2612_v63, %v2380_v42  ;;  %vm519_vm14 = vcmp.eq.s32.totalorder %v2373_v37, %v2393_v45 }
  0x94   : > { %vm665_vm7 = vmor %vm532_vm4, %vm601_vm5 }
  0x95   : > { %vm2060_vm3 = vmpackc.low %vm665_vm7, %vm661_vm2  ;;  %vm588_vm2 = vcmp.eq.s32.totalorder %v2373_v37, %v2395_v46  ;;  %vm592_vm7 = vcmp.eq.s32.totalorder %v2612_v63, %v2395_v46 }
  0x96   : > { %2061 = vmatpush.bf16.msk.msrb.mxu3 %vm2060_vm3, %v2215_v49  ;;  %vm650_vm12 = vmor %vm517_vm6, %vm586_vm8  ;;  %vm523_vm8 = vcmp.eq.s32.totalorder %v2612_v63, %v2393_v45  ;;  %vm520_vm3 = vcmp.eq.s32.totalorder %v2373_v37, %v2402_v47 }
  0x97   : > { %vm654_vm15 = vmor %vm521_vm9, %vm590_vm10 }
  0x98   : > { %vm2014_vm4 = vmpackc.low %vm654_vm15, %vm650_vm12  ;;  %vm589_vm12 = vcmp.eq.s32.totalorder %v2373_v37, %v2404_v48  ;;  %vm593_vm15 = vcmp.eq.s32.totalorder %v2612_v63, %v2404_v48 }
  0x99   : > { %2015 = vmatpush.bf16.msk.msrb.mxu0 %vm2014_vm4, %v2215_v49  ;;  %vm651_vm5 = vmor %vm518_vm0, %vm587_vm1  ;;  %vm524_vm1 = vcmp.eq.s32.totalorder %v2612_v63, %v2402_v47 }
  0x9a   : > { %vm655_vm6 = vmor %vm522_vm13, %vm591_vm11 }
  0x9b   : > { %vm2030_vm9 = vmpackc.low %vm655_vm6, %vm651_vm5 }
  0x9c   : > { %2031 = vmatpush.bf16.msk.msrb.mxu1 %vm2030_vm9, %v2215_v49  ;;  %vm652_vm10 = vmor %vm519_vm14, %vm588_vm2  ;;  %1159 = vmatmul.bf16.vlgmr.msrb.gmra.mxu0 %v2139_v0  ;;  %vm2921_vm14 = vcmask 261120  }
  0x9d   : > { %vm656_vm0 = vmor %vm523_vm8, %vm592_vm7 }
  0x9e   : > { %vm2046_vm13 = vmpackc.low %vm656_vm0, %vm652_vm10 }
  0x9f   : > { %2047 = vmatpush.bf16.msk.msrb.mxu2 %vm2046_vm13, %v2215_v49  ;;  %vm653_vm11 = vmor %vm520_vm3, %vm589_vm12  ;;  %1178 = vmatmul.bf16.vlgmr.msrb.gmra.mxu1 %v2139_v0 }
  0xa0   : > { %vm657_vm4 = vmor %vm524_vm1, %vm593_vm15 }
  0xa1   : > { %vm2062_vm5 = vmpackc.low %vm657_vm4, %vm653_vm11 }
  0xa2   : > { %2063 = vmatpush.bf16.msk.msrb.mxu3 %vm2062_vm5, %v2215_v49  ;;  %1197 = vmatmul.bf16.vlgmr.msrb.gmra.mxu2 %v2139_v0  ;;  %vm2922_vm2 = vmmov %vm2921_vm14 }
  0xa3   : > { %vm2923_vm6 = vmmov %vm2922_vm2 }
  0xa4   : > { %vm2924_vm8 = vmmov %vm2922_vm2 }
  0xa5   : > { %1216 = vmatmul.bf16.vlgmr.msrb.gmra.mxu3 %v2139_v0  ;;  %vm2925_vm7 = vmmov %vm2922_vm2 }
  0xa6   : > { %vm2926_vm9 = vmmov %vm2922_vm2 }
  0xa7   : > { %vm2927_vm10 = vmmov %vm2922_vm2 }
  0xa8   : > { %vm2928_vm3 = vmmov %vm2922_vm2 }
  0xac   : > { %1164 = vmatmul.bf16.gmra.mxu0 %v2140_v1 }
  0xaf   : > { %1183 = vmatmul.bf16.gmra.mxu1 %v2140_v1 }
  0xb2   : > { %1202 = vmatmul.bf16.gmra.mxu2 %v2140_v1 }
  0xb5   : > { %1221 = vmatmul.bf16.gmra.mxu3 %v2140_v1 }
  0xb9   : > { %v1072_v2 = vpop.f32.mrf.mxu0 }
  0xba   : > { %v1091_v3 = vpop.f32.mrf.mxu1 }
  0xc0   : > { %v2662_v5 = vpop.f32.mrf.mxu2 }
  0xc1   : > { %v1074_v4 = vpop.f32.mrf.mxu0  ;;  %v2664_v7 = vpop.f32.mrf.mxu3 }
  0xc2   : > { %v1093_v6 = vpop.f32.mrf.mxu1 }
  0xc8   : > { %v1112_v9 = vpop.f32.mrf.mxu2 }
  0xc9   : > { %v2666_v11 = vpop.f32.mrf.mxu3 }
  0xcc   : > { %v1077_v8 = vpop.f32.mrf.mxu0 }
  0xd1   : > { %v1096_v10 = vpop.f32.mrf.mxu1 }
  0xd4   : > { %v1079_v12 = vpop.f32.mrf.mxu0 }
  0xd8   : > { %v1115_v13 = vpop.f32.mrf.mxu2 }
  0xd9   : > { %v1098_v14 = vpop.f32.mrf.mxu1 }
  0xda   : > { %v1134_v15 = vpop.f32.mrf.mxu3 }
  0xe0   : > { %v1117_v17 = vpop.f32.mrf.mxu2 }
  0xe2   : > { %v1136_v19 = vpop.f32.mrf.mxu3 }
 0x119   : > { %v1160_v16 = vpop.f32.mrf.mxu0 }
 0x11a   : > { %v1161_v34 = vadd.f32 %v1160_v16, %v1072_v2 }
 0x11c   : > { %v1179_v18 = vpop.f32.mrf.mxu1  ;;  %v1227_v48 = vmax.f32 %v1161_v34, 0.0 }
 0x11d   : > { %v1180_v45 = vadd.f32 %v1179_v18, %v1091_v3 }
 0x11f   : > { %v1228_v55 = vmax.f32 %v1180_v45, 0.0 }
 0x121   : > { %v1162_v20 = vpop.f32.mrf.mxu0 }
 0x122   : > { %v1163_v30 = vadd.f32 %v1162_v20, %v1074_v4 }
 0x124   : > { %v1181_v21 = vpop.f32.mrf.mxu1  ;;  %v1231_v43 = vmax.f32 %v1163_v30, 0.0 }
 0x125   : > { %v1198_v22 = vpop.f32.mrf.mxu2  ;;  %v1182_v40 = vadd.f32 %v1181_v21, %v1093_v6  ;;  %v1257_v6 = vld [vmem:[%s2908_s6 + $0x10] sm:$0xff] }
 0x126   : > { %v1243_v53 = vpack.c.bf16 %v1231_v43, %v1227_v48  ;;  %1271 = vperm.xlu0 %2187, %v1257_v6  }
 0x127   : > { %v1232_v51 = vmax.f32 %v1182_v40, 0.0 }
 0x128   : > { %v1217_v23 = vpop.f32.mrf.mxu3 }
 0x129   : > { %v1165_v24 = vpop.f32.mrf.mxu0  ;;  %v1244_v1 = vpack.c.bf16 %v1232_v51, %v1228_v55 }
 0x12a   : > { %v1166_v28 = vadd.f32 %v1165_v24, %v1077_v8 }
 0x12c   : > { %v1184_v25 = vpop.f32.mrf.mxu1  ;;  %v1235_v35 = vmax.f32 %v1166_v28, 0.0 }
 0x12d   : > { %v1200_v26 = vpop.f32.mrf.mxu2  ;;  %v1185_v32 = vadd.f32 %v1184_v25, %v1096_v10  ;;  %v1199_v10 = vadd.f32 %v1198_v22, %v2662_v5 }
 0x12e   : > { %v1201_v3 = vadd.f32 %v1200_v26, %v1112_v9  ;;  %v1258_v26 = vld [vmem:[%s2908_s6 + $0x18] sm:$0xff] }
 0x12f   : > { %v1236_v46 = vmax.f32 %v1185_v32, 0.0  ;;  %v1229_v5 = vmax.f32 %v1199_v10, 0.0  ;;  %1276 = vperm.xlu0 %2187, %v1258_v26  }
 0x130   : > { %v1219_v27 = vpop.f32.mrf.mxu3  ;;  %v1233_v18 = vmax.f32 %v1201_v3, 0.0 }
 0x131   : > { %v1167_v29 = vpop.f32.mrf.mxu0  ;;  %v1220_v9 = vadd.f32 %v1219_v27, %v2666_v11 }
 0x132   : > { %v1168_v31 = vadd.f32 %v1167_v29, %v1079_v12  ;;  %v1245_v28 = vpack.c.bf16 %v1233_v18, %v1229_v5  ;;  %v877_v5 = vperm.slane %v2371_v36, 3 }
 0x133   : > { %v1234_v22 = vmax.f32 %v1220_v9, 0.0 }
 0x134   : > { %v1239_v38 = vmax.f32 %v1168_v31, 0.0  ;;  %v1186_v39 = vpop.f32.mrf.mxu1 }
 0x135   : > { %v1203_v41 = vpop.f32.mrf.mxu2  ;;  %v1187_v42 = vadd.f32 %v1186_v39, %v1098_v14 }
 0x136   : > { %v1247_v44 = vpack.c.bf16 %v1239_v38, %v1235_v35  ;;  %v1204_v0 = vadd.f32 %v1203_v41, %v1115_v13  ;;  %v1256_v13 = vld [vmem:[%s2908_s6 + $0x8] sm:$0xff] }
 0x137   : > { %v1240_v47 = vmax.f32 %v1187_v42, 0.0  ;;  %1266 = vperm.xlu1 %2188, %v1256_v13  }
 0x138   : > { %v1222_v50 = vpop.f32.mrf.mxu3  ;;  %1301 = vmatpush.bf16.msra.mxu0 %v1247_v44  ;;  %v1237_v12 = vmax.f32 %v1204_v0, 0.0 }
 0x139   : > { %v1248_v52 = vpack.c.bf16 %v1240_v47, %v1236_v46  ;;  %v1223_v8 = vadd.f32 %v1222_v50, %v1134_v15  ;;  %v1218_v15 = vadd.f32 %v1217_v23, %v2664_v7  ;;  %v2152_v7 = vld [vmem:[%s2907_s5 + $0x8] sm:$0xff]  ;;  %v1262_v23 = vpop.permute.xlu1 %1261 }
 0x13b   : > { %1320 = vmatpush.bf16.msra.mxu1 %v1248_v52  ;;  %v1238_v21 = vmax.f32 %v1223_v8, 0.0  ;;  %v1230_v11 = vmax.f32 %v1218_v15, 0.0 }
 0x13c   : > { %1302 = vmatpush.bf16.msra.mxu0 %v1243_v53 }
 0x13d   : > { %v1205_v2 = vpop.f32.mrf.mxu2 }
 0x13e   : > { %v1206_v4 = vadd.f32 %v1205_v2, %v1117_v17 }
 0x13f   : > { %1321 = vmatpush.bf16.msra.mxu1 %v1244_v1  ;;  %2072 = vmatmul.msk.bf16.vlgmr.msra.gmra.mxu0 %vm2921_vm14, %v2151_v56 }
 0x140   : > { %v1241_v14 = vmax.f32 %v1206_v4, 0.0  ;;  %v1224_v16 = vpop.f32.mrf.mxu3  ;;  %v2710_v4 = vperm.slane %v2371_v36, 0 }
 0x141   : > { %v1225_v17 = vadd.f32 %v1224_v16, %v1136_v19  ;;  %v1246_v19 = vpack.c.bf16 %v1234_v22, %v1230_v11 }
 0x142   : > { %v1249_v20 = vpack.c.bf16 %v1241_v14, %v1237_v12  ;;  %2074 = vmatmul.msk.bf16.vlgmr.msra.gmra.mxu1 %vm2922_vm2, %v2151_v56  ;;  %v2714_v12 = vperm.slane %v2371_v36, 1  ;;  %vm878_vm12 = vcmp.eq.s32.totalorder %v2373_v37, %v2710_v4  ;;  %vm882_vm0 = vcmp.eq.s32.totalorder %v2612_v63, %v2710_v4 }
 0x143   : > { %v1242_v24 = vmax.f32 %v1225_v17, 0.0  ;;  %vm2080_vm1 = vmpackc.low %vm882_vm0, %vm878_vm12  ;;  %vm886_vm4 = vcmp.eq.s32.totalorder %v2565_v61, %v2710_v4  ;;  %vm890_vm5 = vcmp.eq.s32.totalorder %v2573_v62, %v2710_v4 }
 0x144   : > { %1339 = vmatpush.bf16.msra.mxu2 %v1249_v20  ;;  %vm879_vm15 = vcmp.eq.s32.totalorder %v2373_v37, %v2714_v12  ;;  %vm883_vm13 = vcmp.eq.s32.totalorder %v2612_v63, %v2714_v12 }
 0x145   : > { %v1250_v25 = vpack.c.bf16 %v1242_v24, %v1238_v21  ;;  %vm2088_vm11 = vmpackc.low %vm883_vm13, %vm879_vm15  ;;  %v876_v21 = vperm.slane %v2371_v36, 2  ;;  %vm898_vm15 = vcmp.eq.s32.totalorder %v2531_v60, %v2710_v4 }
 0x147   : > { %1358 = vmatpush.bf16.msra.mxu3 %v1250_v25  ;;  %vm880_vm14 = vcmp.eq.s32.totalorder %v2373_v37, %v876_v21  ;;  %vm884_vm2 = vcmp.eq.s32.totalorder %v2612_v63, %v876_v21  ;;  %vm888_vm13 = vcmp.eq.s32.totalorder %v2565_v61, %v876_v21 }
 0x148   : > { %1340 = vmatpush.bf16.msra.mxu2 %v1245_v28  ;;  %v1395_v28 = vld [vmem:[#allocation2] sm:$0xff] }
 0x14b   : > { %1359 = vmatpush.bf16.msra.mxu3 %v1246_v19  ;;  %2076 = vmatmul.msk.bf16.vlgmr.msra.gmra.mxu2 %vm2923_vm6, %v2151_v56  ;;  %vm2082_vm6 = vmpackc.low %vm890_vm5, %vm886_vm4  ;;  %vm895_vm5 = vcmp.eq.s32.totalorder %v2523_v59, %v2714_v12 }
 0x14e   : > { %2078 = vmatmul.msk.bf16.vlgmr.msra.gmra.mxu3 %vm2924_vm8, %v2151_v56  ;;  %vm887_vm8 = vcmp.eq.s32.totalorder %v2565_v61, %v2714_v12 }
 0x14f   : > { %2073 = vmatmul.msk.bf16.gmra.mxu0 %vm2925_vm7, %v2152_v7  ;;  %vm891_vm7 = vcmp.eq.s32.totalorder %v2573_v62, %v2714_v12 }
 0x150   : > { %vm2090_vm12 = vmpackc.low %vm891_vm7, %vm887_vm8  ;;  %vm893_vm8 = vcmp.eq.s32.totalorder %v2573_v62, %v877_v5 }
 0x152   : > { %2075 = vmatmul.msk.bf16.gmra.mxu1 %vm2926_vm9, %v2152_v7  ;;  %vm2096_vm9 = vmpackc.low %vm884_vm2, %vm880_vm14  ;;  %vm899_vm14 = vcmp.eq.s32.totalorder %v2531_v60, %v2714_v12 }
 0x153   : > { %vm2092_vm7 = vmpackc.low %vm899_vm14, %vm895_vm5  ;;  %vm901_vm5 = vcmp.eq.s32.totalorder %v2531_v60, %v877_v5 }
 0x15b   : > { %2077 = vmatmul.msk.bf16.gmra.mxu2 %vm2927_vm10, %v2152_v7  ;;  %vm881_vm10 = vcmp.eq.s32.totalorder %v2373_v37, %v877_v5 }
 0x15e   : > { %2079 = vmatmul.msk.bf16.gmra.mxu3 %vm2928_vm3, %v2152_v7  ;;  %vm885_vm3 = vcmp.eq.s32.totalorder %v2612_v63, %v877_v5 }
 0x15f   : > { %vm2104_vm0 = vmpackc.low %vm885_vm3, %vm881_vm10  ;;  %vm902_vm10 = vcmp.eq.s32.totalorder %v2485_v57, %v2710_v4  ;;  %vm906_vm3 = vcmp.eq.s32.totalorder %v2491_v58, %v2710_v4 }
 0x198   : > { %v1272_v38 = vpop.permute.xlu0 %1271 }
 0x1a1   : > { %v1277_v48 = vpop.permute.xlu0 %1276 }
 0x1a9   : > { %v1267_v32 = vpop.permute.xlu1 %1266 }
 0x1bc   : > { %v1304_v27 = vpop.f32.mrf.mxu0 }
 0x1bd   : > { %v1305_v29 = vadd.f32 %v1304_v27, %v1262_v23  ;;  %v1396_v27 = vld [vmem:[#allocation2 + $0x8] sm:$0xff] }
 0x1bf   : > { %v1323_v30 = vpop.f32.mrf.mxu1  ;;  %1371 = vst [vmem:[%s2339_s18] sm:$0xff] %v1305_v29 }
 0x1c0   : > { %v1324_v31 = vadd.f32 %v1323_v30, %v1262_v23 }
 0x1c2   : > { %1372 = vst [vmem:[%s2339_s18 + $0x8] sm:$0xff] %v1324_v31 }
 0x1c4   : > { %v1306_v33 = vpop.f32.mrf.mxu0 }
 0x1c5   : > { %v1307_v34 = vadd.f32 %v1306_v33, %v1267_v32 }
 0x1c7   : > { %v1325_v35 = vpop.f32.mrf.mxu1  ;;  %1375 = vst [vmem:[%s2339_s18 + $0x20] sm:$0xff] %v1307_v34  ;;  %v1387_v8 = vpack.c.bf16 %v1307_v34, %v1305_v29 }
 0x1c8   : > { %v1326_v39 = vadd.f32 %v1325_v35, %v1267_v32 }
 0x1ca   : > { %1376 = vst [vmem:[%s2339_s18 + $0x28] sm:$0xff] %v1326_v39  ;;  %v1388_v16 = vpack.c.bf16 %v1326_v39, %v1324_v31 }
 0x1cc   : > { %v1309_v40 = vpop.f32.mrf.mxu0 }
 0x1cd   : > { %v1310_v41 = vadd.f32 %v1309_v40, %v1272_v38 }
 0x1ce   : > { %v1342_v42 = vpop.f32.mrf.mxu2 }
 0x1cf   : > { %v1343_v43 = vadd.f32 %v1342_v42, %v1262_v23  ;;  %1379 = vst [vmem:[%s2339_s18 + $0x40] sm:$0xff] %v1310_v41  ;;  %v1328_v44 = vpop.f32.mrf.mxu1 }
 0x1d0   : > { %v1329_v45 = vadd.f32 %v1328_v44, %v1272_v38 }
 0x1d1   : > { %1373 = vst [vmem:[%s2339_s18 + $0x10] sm:$0xff] %v1343_v43  ;;  %v1361_v46 = vpop.f32.mrf.mxu3 }
 0x1d2   : > { %v1362_v47 = vadd.f32 %v1361_v46, %v1262_v23  ;;  %1380 = vst [vmem:[%s2339_s18 + $0x48] sm:$0xff] %v1329_v45 }
 0x1d4   : > { %1374 = vst [vmem:[%s2339_s18 + $0x18] sm:$0xff] %v1362_v47  ;;  %v1311_v50 = vpop.f32.mrf.mxu0 }
 0x1d5   : > { %v1312_v51 = vadd.f32 %v1311_v50, %v1277_v48 }
 0x1d6   : > { %v1344_v52 = vpop.f32.mrf.mxu2 }
 0x1d7   : > { %v1345_v53 = vadd.f32 %v1344_v52, %v1267_v32  ;;  %1383 = vst [vmem:[%s2339_s18 + $0x60] sm:$0xff] %v1312_v51  ;;  %v1391_v54 = vpack.c.bf16 %v1312_v51, %v1310_v41  ;;  %v1330_v55 = vpop.f32.mrf.mxu1 }
 0x1d8   : > { %v1331_v56 = vadd.f32 %v1330_v55, %v1277_v48 }
 0x1d9   : > { %1377 = vst [vmem:[%s2339_s18 + $0x30] sm:$0xff] %v1345_v53  ;;  %v1363_v0 = vpop.f32.mrf.mxu3  ;;  %1409 = vmatpush.bf16.xpose.msrb.mxu0 %v1391_v54  ;;  %v1389_v24 = vpack.c.bf16 %v1345_v53, %v1343_v43 }
 0x1da   : > { %v1364_v1 = vadd.f32 %v1363_v0, %v1267_v32  ;;  %1384 = vst [vmem:[%s2339_s18 + $0x68] sm:$0xff] %v1331_v56  ;;  %v1392_v2 = vpack.c.bf16 %v1331_v56, %v1329_v45  ;;  %v1399_v0 = vld [vmem:[#allocation2 + $0x20] sm:$0xff] }
 0x1dc   : > { %1378 = vst [vmem:[%s2339_s18 + $0x38] sm:$0xff] %v1364_v1  ;;  %1438 = vmatpush.bf16.xpose.msrb.mxu1 %v1392_v2  ;;  %v1390_v22 = vpack.c.bf16 %v1364_v1, %v1362_v47  ;;  %v1398_v47 = vld [vmem:[#allocation2 + $0x18] sm:$0xff] }
 0x1de   : > { %v1347_v3 = vpop.f32.mrf.mxu2 }
 0x1df   : > { %v1348_v6 = vadd.f32 %v1347_v3, %v1272_v38 }
 0x1e1   : > { %1381 = vst [vmem:[%s2339_s18 + $0x50] sm:$0xff] %v1348_v6  ;;  %v1366_v10 = vpop.f32.mrf.mxu3  ;;  %1410 = vmatpush.bf16.xpose.msrb.mxu0 %v1387_v8 }
 0x1e2   : > { %v1367_v14 = vadd.f32 %v1366_v10, %v1272_v38  ;;  %v1397_v38 = vld [vmem:[#allocation2 + $0x10] sm:$0xff] }
 0x1e4   : > { %1382 = vst [vmem:[%s2339_s18 + $0x58] sm:$0xff] %v1367_v14  ;;  %1439 = vmatpush.bf16.xpose.msrb.mxu1 %v1388_v16 }
 0x1e6   : > { %v1349_v13 = vpop.f32.mrf.mxu2 }
 0x1e7   : > { %v1350_v9 = vadd.f32 %v1349_v13, %v1277_v48 }
 0x1e8   : > { %2081 = vmatmul.msk.bf16.vlgmr.msrb.gmra.mxu0 %vm2080_vm1, %v2215_v49  ;;  %vm894_vm1 = vcmp.eq.s32.totalorder %v2523_v59, %v2710_v4 }
 0x1e9   : > { %1385 = vst [vmem:[%s2339_s18 + $0x70] sm:$0xff] %v1350_v9  ;;  %v1393_v17 = vpack.c.bf16 %v1350_v9, %v1348_v6  ;;  %v1368_v18 = vpop.f32.mrf.mxu3  ;;  %vm2084_vm4 = vmpackc.low %vm898_vm15, %vm894_vm1  ;;  %vm903_vm15 = vcmp.eq.s32.totalorder %v2485_v57, %v2714_v12 }
 0x1ea   : > { %v1369_v20 = vadd.f32 %v1368_v18, %v1277_v48  ;;  %vm2086_vm1 = vmpackc.low %vm906_vm3, %vm902_vm10  ;;  %vm909_vm10 = vcmp.eq.s32.totalorder %v2491_v58, %v877_v5 }
 0x1eb   : > { %1467 = vmatpush.bf16.xpose.msrb.mxu2 %v1393_v17  ;;  %2089 = vmatmul.msk.bf16.vlgmr.msrb.gmra.mxu1 %vm2088_vm11, %v2215_v49  ;;  %vm892_vm11 = vcmp.eq.s32.totalorder %v2573_v62, %v876_v21 }
 0x1ec   : > { %1386 = vst [vmem:[%s2339_s18 + $0x78] sm:$0xff] %v1369_v20  ;;  %v1394_v15 = vpack.c.bf16 %v1369_v20, %v1367_v14  ;;  %vm2098_vm2 = vmpackc.low %vm892_vm11, %vm888_vm13  ;;  %vm907_vm13 = vcmp.eq.s32.totalorder %v2491_v58, %v2714_v12  ;;  %v1400_v14 = vld [vmem:[#allocation2 + $0x28] sm:$0xff] }
 0x1ed   : > { %vm2094_vm14 = vmpackc.low %vm907_vm13, %vm903_vm15 }
 0x1ee   : > { %1496 = vmatpush.bf16.xpose.msrb.mxu3 %v1394_v15  ;;  %v1401_v15 = vld [vmem:[#allocation2 + $0x30] sm:$0xff] }
 0x1f3   : > { %1468 = vmatpush.bf16.xpose.msrb.mxu2 %v1389_v24 }
 0x1f6   : > { %1497 = vmatpush.bf16.xpose.msrb.mxu3 %v1390_v22 }
 0x1f8   : > { %2083 = vmatmul.msk.bf16.gmra.mxu0 %vm2082_vm6, %v2215_v49  ;;  %vm889_vm6 = vcmp.eq.s32.totalorder %v2565_v61, %v877_v5 }
 0x1fa   : > { %2097 = vmatmul.msk.bf16.vlgmr.msrb.gmra.mxu2 %vm2096_vm9, %v2215_v49  ;;  %vm2106_vm9 = vmpackc.low %vm893_vm8, %vm889_vm6  ;;  %vm904_vm6 = vcmp.eq.s32.totalorder %v2485_v57, %v876_v21  ;;  %vm908_vm8 = vcmp.eq.s32.totalorder %v2491_v58, %v876_v21 }
 0x1fb   : > { %2091 = vmatmul.msk.bf16.gmra.mxu1 %vm2090_vm12, %v2215_v49  ;;  %vm896_vm12 = vcmp.eq.s32.totalorder %v2523_v59, %v876_v21 }
 0x1fd   : > { %2105 = vmatmul.msk.bf16.vlgmr.msrb.gmra.mxu3 %vm2104_vm0, %v2215_v49  ;;  %vm900_vm0 = vcmp.eq.s32.totalorder %v2531_v60, %v876_v21 }
 0x1fe   : > { %vm2100_vm11 = vmpackc.low %vm900_vm0, %vm896_vm12  ;;  %vm2929_vm12 = vcmask 261120  }
 0x1ff   : > { %vm2930_vm0 = vmmov %vm2929_vm12 }
 0x200   : > { %vm2932_vm15 = vmmov %vm2930_vm0 }
 0x201   : > { %vm2933_vm13 = vmmov %vm2930_vm0 }
 0x208   : > { %2085 = vmatmul.msk.bf16.gmra.mxu0 %vm2084_vm4, %v2215_v49  ;;  %vm897_vm4 = vcmp.eq.s32.totalorder %v2523_v59, %v877_v5 }
 0x20a   : > { %2099 = vmatmul.msk.bf16.gmra.mxu2 %vm2098_vm2, %v2215_v49  ;;  %vm2108_vm2 = vmpackc.low %vm901_vm5, %vm897_vm4 }
 0x20b   : > { %2093 = vmatmul.msk.bf16.gmra.mxu1 %vm2092_vm7, %v2215_v49  ;;  %vm2102_vm7 = vmpackc.low %vm908_vm8, %vm904_vm6 }
 0x20c   : > { %vm2935_vm4 = vmmov %vm2930_vm0 }
 0x20d   : > { %2107 = vmatmul.msk.bf16.gmra.mxu3 %vm2106_vm9, %v2215_v49  ;;  %vm905_vm9 = vcmp.eq.s32.totalorder %v2485_v57, %v877_v5  ;;  %vm2936_vm5 = vmmov %vm2930_vm0 }
 0x20e   : > { %vm2110_vm3 = vmpackc.low %vm909_vm10, %vm905_vm9 }
 0x218   : > { %2087 = vmatmul.msk.bf16.gmra.mxu0 %vm2086_vm1, %v2215_v49  ;;  %vm2931_vm1 = vmmov %vm2930_vm0 }
 0x21a   : > { %2101 = vmatmul.msk.bf16.gmra.mxu2 %vm2100_vm11, %v2215_v49  ;;  %vm2934_vm11 = vmmov %vm2930_vm0 }
 0x21b   : > { %2095 = vmatmul.msk.bf16.gmra.mxu1 %vm2094_vm14, %v2215_v49 }
 0x21d   : > { %2109 = vmatmul.msk.bf16.gmra.mxu3 %vm2108_vm2, %v2215_v49 }
 0x22a   : > { %2103 = vmatmul.msk.bf16.gmra.mxu2 %vm2102_vm7, %v2215_v49 }
 0x22d   : > { %2111 = vmatmul.msk.bf16.gmra.mxu3 %vm2110_vm3, %v2215_v49 }
 0x265   : > { %v1412_v36 = vpop.f32.mrf.mxu0 }
 0x268   : > { %v1441_v37 = vpop.f32.mrf.mxu1 }
 0x269   : > { %v1442_v61 = vadd.f32 %v1441_v37, %v1412_v36 }
 0x26d   : > { %v1414_v59 = vpop.f32.mrf.mxu0 }
 0x270   : > { %v1443_v60 = vpop.f32.mrf.mxu1 }
 0x271   : > { %v1444_v7 = vadd.f32 %v1443_v60, %v1414_v59 }
 0x275   : > { %v1417_v25 = vpop.f32.mrf.mxu0 }
 0x278   : > { %v1446_v26 = vpop.f32.mrf.mxu1 }
 0x279   : > { %v1447_v32 = vadd.f32 %v1446_v26, %v1417_v25 }
 0x27d   : > { %v1470_v62 = vpop.f32.mrf.mxu2  ;;  %v1419_v29 = vpop.f32.mrf.mxu0 }
 0x27e   : > { %v1471_v63 = vadd.f32 %v1470_v62, %v1442_v61  ;;  %v1402_v61 = vld [vmem:[#allocation2 + $0x38] sm:$0xff] }
 0x280   : > { %v1499_v11 = vpop.f32.mrf.mxu3  ;;  %v1448_v31 = vpop.f32.mrf.mxu1 }
 0x281   : > { %v1500_v19 = vadd.f32 %v1499_v11, %v1471_v63  ;;  %v1449_v44 = vadd.f32 %v1448_v31, %v1419_v29 }
 0x283   : > { %v1519_v57 = vadd.f32 %v1500_v19, %v1395_v28 }
 0x285   : > { %1527 = vst.msk [vmem:[#allocation2] sm:$0xff] %vm2929_vm12, %v1519_v57  ;;  %v1472_v58 = vpop.f32.mrf.mxu2  ;;  %v1422_v41 = vpop.f32.mrf.mxu0 }
 0x286   : > { %v1473_v23 = vadd.f32 %v1472_v58, %v1444_v7 }
 0x288   : > { %v1501_v49 = vpop.f32.mrf.mxu3  ;;  %v1451_v43 = vpop.f32.mrf.mxu1 }
 0x289   : > { %v1502_v30 = vadd.f32 %v1501_v49, %v1473_v23  ;;  %v1452_v51 = vadd.f32 %v1451_v43, %v1422_v41 }
 0x28b   : > { %v1520_v33 = vadd.f32 %v1502_v30, %v1396_v27 }
 0x28d   : > { %1528 = vst.msk [vmem:[#allocation2 + $0x8] sm:$0xff] %vm2930_vm0, %v1520_v33  ;;  %v1475_v34 = vpop.f32.mrf.mxu2  ;;  %v1424_v53 = vpop.f32.mrf.mxu0 }
 0x28e   : > { %v1476_v35 = vadd.f32 %v1475_v34, %v1447_v32 }
 0x290   : > { %v1504_v39 = vpop.f32.mrf.mxu3  ;;  %v1453_v55 = vpop.f32.mrf.mxu1 }
 0x291   : > { %v1505_v40 = vadd.f32 %v1504_v39, %v1476_v35  ;;  %v1454_v4 = vadd.f32 %v1453_v55, %v1424_v53 }
 0x293   : > { %v1521_v42 = vadd.f32 %v1505_v40, %v1397_v38 }
 0x295   : > { %1529 = vst.msk [vmem:[#allocation2 + $0x10] sm:$0xff] %vm2931_vm1, %v1521_v42  ;;  %v1477_v45 = vpop.f32.mrf.mxu2  ;;  %v1427_v10 = vpop.f32.mrf.mxu0 }
 0x296   : > { %v1478_v46 = vadd.f32 %v1477_v45, %v1449_v44 }
 0x298   : > { %v1506_v48 = vpop.f32.mrf.mxu3  ;;  %v1456_v12 = vpop.f32.mrf.mxu1 }
 0x299   : > { %v1507_v50 = vadd.f32 %v1506_v48, %v1478_v46  ;;  %v1457_v9 = vadd.f32 %v1456_v12, %v1427_v10 }
 0x29b   : > { %v1522_v52 = vadd.f32 %v1507_v50, %v1398_v47 }
 0x29d   : > { %1530 = vst.msk [vmem:[#allocation2 + $0x18] sm:$0xff] %vm2932_vm15, %v1522_v52  ;;  %v1480_v54 = vpop.f32.mrf.mxu2  ;;  %v1429_v5 = vpop.f32.mrf.mxu0 }
 0x29e   : > { %v1481_v56 = vadd.f32 %v1480_v54, %v1452_v51 }
 0x2a0   : > { %v1509_v1 = vpop.f32.mrf.mxu3  ;;  %v1458_v22 = vpop.f32.mrf.mxu1 }
 0x2a1   : > { %v1510_v2 = vadd.f32 %v1509_v1, %v1481_v56  ;;  %v1459_v37 = vadd.f32 %v1458_v22, %v1429_v5 }
 0x2a3   : > { %v1523_v3 = vadd.f32 %v1510_v2, %v1399_v0 }
 0x2a5   : > { %1531 = vst.msk [vmem:[#allocation2 + $0x20] sm:$0xff] %vm2933_vm13, %v1523_v3  ;;  %v1482_v6 = vpop.f32.mrf.mxu2 }
 0x2a6   : > { %v1483_v8 = vadd.f32 %v1482_v6, %v1454_v4 }
 0x2a8   : > { %v1511_v16 = vpop.f32.mrf.mxu3 }
 0x2a9   : > { %v1512_v13 = vadd.f32 %v1511_v16, %v1483_v8 }
 0x2ab   : > { %v1524_v17 = vadd.f32 %v1512_v13, %v1400_v14 }
 0x2ad   : > { %1532 = vst.msk [vmem:[#allocation2 + $0x28] sm:$0xff] %vm2934_vm11, %v1524_v17  ;;  %v1485_v18 = vpop.f32.mrf.mxu2 }
 0x2ae   : > { %v1486_v20 = vadd.f32 %v1485_v18, %v1457_v9 }
 0x2b0   : > { %v1514_v21 = vpop.f32.mrf.mxu3 }
 0x2b1   : > { %v1515_v24 = vadd.f32 %v1514_v21, %v1486_v20 }
 0x2b3   : > { %v1525_v36 = vadd.f32 %v1515_v24, %v1401_v15 }
 0x2b5   : > { %1533 = vst.msk [vmem:[#allocation2 + $0x30] sm:$0xff] %vm2935_vm4, %v1525_v36  ;;  %v1487_v59 = vpop.f32.mrf.mxu2 }
 0x2b6   : > { %v1488_v60 = vadd.f32 %v1487_v59, %v1459_v37 }
 0x2b8   : > { %v1516_v62 = vpop.f32.mrf.mxu3 }
 0x2b9   : > { %v1517_v63 = vadd.f32 %v1516_v62, %v1488_v60  ;;  %1538 = sbr.rel (%p2112_p12) target bundleno = 1041 (0x411), region = 95 }
 0x2bb   : > { %v1526_v25 = vadd.f32 %v1517_v63, %v1402_v61 }
 0x2bd   : > { %1534 = vst.msk [vmem:[#allocation2 + $0x38] sm:$0xff] %vm2936_vm5, %v1526_v25 }
 0x2be   : > { %v2154_v26 = vld [vmem:[%s2910_s8 + $0x8] sm:$0xff]  ;;  %v2153_v28 = vld [vmem:[%s2910_s8] sm:$0xff]  ;;  %vm2937_vm14 = vcmask 261120   ;;  %v1541_v27 = vld [vmem:[#allocation2 + $0x10] sm:$0xff]  ;;  %vm1648_vm7 = vcmask 130048  }
 0x2bf   : > { %v1539_v11 = vld [vmem:[#allocation2] sm:$0xff]  ;;  %1593 = vmatpush.bf16.msra.mxu0 %v2154_v26  ;;  %v1540_v19 = vld [vmem:[#allocation2 + $0x8] sm:$0xff]  ;;  %2157 = vmatpush.bf16.msra.mxu2 %v2154_v26  ;;  %vm2938_vm2 = vmmov %vm2937_vm14 }
 0x2c0   : > { %v1543_v57 = vld [vmem:[#allocation2 + $0x20] sm:$0xff]  ;;  %v1544_v7 = vld [vmem:[#allocation2 + $0x28] sm:$0xff]  ;;  %v1547_v58 = vpack.c.bf16 %v1540_v19, %v1539_v11  ;;  %v1542_v49 = vld [vmem:[#allocation2 + $0x18] sm:$0xff] }
 0x2c1   : > { %v1549_v23 = vpack.c.bf16 %v1544_v7, %v1543_v57  ;;  %v1545_v29 = vld [vmem:[#allocation2 + $0x30] sm:$0xff]  ;;  %v1548_v31 = vpack.c.bf16 %v1542_v49, %v1541_v27  ;;  %vm2939_vm6 = vmmov %vm2938_vm2  ;;  %v2155_v33 = vld [vmem:[%s2911_s9] sm:$0xff] }
 0x2c2   : > { %vm2940_vm8 = vmmov %vm2938_vm2  ;;  %1668 = vmatpush.bf16.msra.mxu1 %v2155_v33  ;;  %2159 = vmatpush.bf16.msra.mxu3 %v2155_v33  ;;  %v1551_v35 = vld [vmem:[%s2909_s7] sm:$0xff]  ;;  %v1552_v38 = vld [vmem:[%s2909_s7 + $0x8] sm:$0xff] }
 0x2c3   : > { %1594 = vmatpush.bf16.msra.mxu0 %v2153_v28  ;;  %2158 = vmatpush.bf16.msra.mxu2 %v2153_v28  ;;  %v1553_v46 = vld [vmem:[%s2909_s7 + $0x10] sm:$0xff]  ;;  %v1554_v48 = vld [vmem:[%s2909_s7 + $0x18] sm:$0xff]  ;;  %v1555_v0 = vld [vmem:[%s2909_s7 + $0x20] sm:$0xff] }
 0x2c4   : > { %v1546_v30 = vld [vmem:[#allocation2 + $0x38] sm:$0xff]  ;;  %v1556_v1 = vld [vmem:[%s2909_s7 + $0x28] sm:$0xff]  ;;  %v1557_v12 = vld [vmem:[%s2909_s7 + $0x30] sm:$0xff] }
 0x2c5   : > { %v1550_v32 = vpack.c.bf16 %v1546_v30, %v1545_v29  ;;  %v1558_v14 = vld [vmem:[%s2909_s7 + $0x38] sm:$0xff]  ;;  %v2189_v15 = vld [vmem:[%s2912_s10] ss:$0 sm:$0xff] }
 0x2c6   : > { %2121 = vmatmul.msk.bf16.vlgmr.msra.gmra.mxu0 %vm2937_vm14, %v1547_v58  ;;  %2123 = vmatmul.msk.bf16.vlgmr.msra.gmra.mxu2 %vm2938_vm2, %v1549_v23 }
 0x2d6   : > { %2122 = vmatmul.msk.bf16.gmra.mxu0 %vm2939_vm6, %v1548_v31  ;;  %2124 = vmatmul.msk.bf16.gmra.mxu2 %vm2940_vm8, %v1550_v32 }
 0x343   : > { %v1596_v34 = vpop.f32.mrf.mxu0 }
 0x344   : > { %v1616_v39 = vadd.f32 %v1596_v34, %v1551_v35 }
 0x346   : > { %v1624_v42 = vmax.f32 %v1616_v39, 0.0 }
 0x349   : > { %v1606_v47 = vpop.f32.mrf.mxu2 }
 0x34a   : > { %v1620_v2 = vadd.f32 %v1606_v47, %v1555_v0 }
 0x34b   : > { %v1598_v40 = vpop.f32.mrf.mxu0 }
 0x34c   : > { %v1617_v41 = vadd.f32 %v1598_v40, %v1552_v38  ;;  %v1628_v6 = vmax.f32 %v1620_v2, 0.0 }
 0x34e   : > { %v1625_v43 = vmax.f32 %v1617_v41, 0.0 }
 0x350   : > { %v1632_v44 = vpack.c.bf16 %v1625_v43, %v1624_v42 }
 0x351   : > { %v1608_v56 = vpop.f32.mrf.mxu2 }
 0x352   : > { %2129 = vmatmul.msk.bf16.vlgmr.msra.gmra.mxu1 %vm1648_vm7, %v1632_v44  ;;  %v1621_v3 = vadd.f32 %v1608_v56, %v1556_v1 }
 0x353   : > { %v1601_v45 = vpop.f32.mrf.mxu0 }
 0x354   : > { %v1618_v50 = vadd.f32 %v1601_v45, %v1553_v46  ;;  %v1629_v8 = vmax.f32 %v1621_v3, 0.0 }
 0x356   : > { %v1626_v53 = vmax.f32 %v1618_v50, 0.0  ;;  %v1634_v10 = vpack.c.bf16 %v1629_v8, %v1628_v6 }
 0x359   : > { %v1611_v4 = vpop.f32.mrf.mxu2 }
 0x35a   : > { %v1622_v13 = vadd.f32 %v1611_v4, %v1557_v12 }
 0x35b   : > { %v1603_v51 = vpop.f32.mrf.mxu0 }
 0x35c   : > { %v1619_v52 = vadd.f32 %v1603_v51, %v1554_v48  ;;  %v1630_v17 = vmax.f32 %v1622_v13, 0.0 }
 0x35e   : > { %v1627_v54 = vmax.f32 %v1619_v52, 0.0 }
 0x360   : > { %v1633_v55 = vpack.c.bf16 %v1627_v54, %v1626_v53 }
 0x361   : > { %v1613_v16 = vpop.f32.mrf.mxu2 }
 0x362   : > { %2130 = vmatmul.msk.bf16.vlgmr.msra.gmra.mxu3 %vm1648_vm7, %v1633_v55  ;;  %v1623_v9 = vadd.f32 %v1613_v16, %v1558_v14 }
 0x364   : > { %v1631_v18 = vmax.f32 %v1623_v9, 0.0 }
 0x366   : > { %v1635_v20 = vpack.c.bf16 %v1631_v18, %v1630_v17 }
 0x372   : > { %2131 = vmatmul.msk.bf16.gmra.mxu3 %vm1648_vm7, %v1634_v10 }
 0x382   : > { %2132 = vmatmul.msk.bf16.gmra.mxu3 %vm1648_vm7, %v1635_v20 }
 0x3cf   : > { %v1670_v21 = vpop.f32.mrf.mxu1 }
 0x3d0   : > { %v1671_v24 = vadd.f32 %v2189_v15, %v1670_v21 }
 0x3d2   : > { %1690 = vst.msk [vmem:[%s2913_s11] sm:$0xff] %vm1648_vm7, %v1671_v24 }
 0x3d7   : > { %v1672_v5 = vpop.f32.mrf.mxu1 }
 0x3d8   : > { %v1673_v22 = vadd.f32 %v2189_v15, %v1672_v5 }
 0x3da   : > { %1691 = vst.msk [vmem:[%s2913_s11 + $0x8] sm:$0xff] %vm1648_vm7, %v1673_v22 }
 0x3e5   : > { %v1675_v36 = vpop.f32.mrf.mxu3 }
 0x3e6   : > { %v1676_v37 = vadd.f32 %v2189_v15, %v1675_v36 }
 0x3e8   : > { %1692 = vst.msk [vmem:[%s2913_s11 + $0x10] sm:$0xff] %vm1648_vm7, %v1676_v37 }
 0x3ed   : > { %v1677_v59 = vpop.f32.mrf.mxu3 }
 0x3ee   : > { %v1678_v60 = vadd.f32 %v2189_v15, %v1677_v59 }
 0x3f0   : > { %1693 = vst.msk [vmem:[%s2913_s11 + $0x18] sm:$0xff] %vm1648_vm7, %v1678_v60 }
 0x3f5   : > { %v1680_v61 = vpop.f32.mrf.mxu3 }
 0x3f6   : > { %v1681_v62 = vadd.f32 %v2189_v15, %v1680_v61 }
 0x3f8   : > { %1694 = vst.msk [vmem:[%s2913_s11 + $0x20] sm:$0xff] %vm1648_vm7, %v1681_v62 }
 0x3fd   : > { %v1682_v63 = vpop.f32.mrf.mxu3 }
 0x3fe   : > { %v1683_v25 = vadd.f32 %v2189_v15, %v1682_v63 }
 0x400   : > { %1695 = vst.msk [vmem:[%s2913_s11 + $0x28] sm:$0xff] %vm1648_vm7, %v1683_v25 }
 0x405   : > { %v1685_v26 = vpop.f32.mrf.mxu3 }
 0x406   : > { %v1686_v28 = vadd.f32 %v2189_v15, %v1685_v26 }
 0x408   : > { %1696 = vst.msk [vmem:[%s2913_s11 + $0x30] sm:$0xff] %vm1648_vm7, %v1686_v28 }
 0x40d   : > { %v1687_v11 = vpop.f32.mrf.mxu3 }
 0x40e   : > { %v1688_v19 = vadd.f32 %v2189_v15, %v1687_v11 }
 0x410   : > { %1697 = vst.msk [vmem:[%s2913_s11 + $0x38] sm:$0xff] %vm1648_vm7, %v1688_v19 }
 0x411 PF: > { %1707 = sbr.rel (!%p2313_p5) target bundleno = 1059 (0x423), region = 103  ;;  %s2156_s30 = sshll.u32 (%p2313_p5), %s2298_s24, 5  ;;  %v1723_v57 = vld [vmem:[%s2339_s18] sm:$0xff] (%p2313_p5)  ;;  %v1725_v7 = vld [vmem:[%s2339_s18 + $0x8] sm:$0xff] (%p2313_p5)  ;;  %v1727_v58 = vld [vmem:[%s2339_s18 + $0x10] sm:$0xff] (%p2313_p5) }
 0x412   : > { %s1710_s14 = scalar_lea.vmem (%p2313_p5), %s2914_s12, %s2156_s30  ;;  %v1729_v23 = vld [vmem:[%s2339_s18 + $0x18] sm:$0xff] (%p2313_p5)  ;;  %v1731_v27 = vld [vmem:[%s2339_s18 + $0x20] sm:$0xff] (%p2313_p5)  ;;  %v1733_v49 = vld [vmem:[%s2339_s18 + $0x28] sm:$0xff] (%p2313_p5) }
 0x413   : > { %1724 = vst [vmem:[%s1710_s14] sm:$0xff] (%p2313_p5), %v1723_v57  ;;  %v1735_v29 = vld [vmem:[%s2339_s18 + $0x30] sm:$0xff] (%p2313_p5)  ;;  %v1737_v30 = vld [vmem:[%s2339_s18 + $0x38] sm:$0xff] (%p2313_p5)  ;;  %v1739_v31 = vld [vmem:[%s2339_s18 + $0x40] sm:$0xff] (%p2313_p5) }
 0x414   : > { %1726 = vst [vmem:[%s1710_s14 + $0x8] sm:$0xff] (%p2313_p5), %v1725_v7  ;;  %v1741_v32 = vld [vmem:[%s2339_s18 + $0x48] sm:$0xff] (%p2313_p5)  ;;  %v1743_v33 = vld [vmem:[%s2339_s18 + $0x50] sm:$0xff] (%p2313_p5)  ;;  %v1745_v34 = vld [vmem:[%s2339_s18 + $0x58] sm:$0xff] (%p2313_p5) }
 0x415   : > { %1728 = vst [vmem:[%s1710_s14 + $0x10] sm:$0xff] (%p2313_p5), %v1727_v58  ;;  %v1747_v35 = vld [vmem:[%s2339_s18 + $0x60] sm:$0xff] (%p2313_p5)  ;;  %v1749_v38 = vld [vmem:[%s2339_s18 + $0x68] sm:$0xff] (%p2313_p5)  ;;  %v1751_v39 = vld [vmem:[%s2339_s18 + $0x70] sm:$0xff] (%p2313_p5) }
 0x416   : > { %1730 = vst [vmem:[%s1710_s14 + $0x18] sm:$0xff] %v1729_v23  ;;  %v1753_v40 = vld [vmem:[%s2339_s18 + $0x78] sm:$0xff] }
 0x417   : > { %1732 = vst [vmem:[%s1710_s14 + $0x40] sm:$0xff] %v1731_v27 }
 0x418   : > { %1734 = vst [vmem:[%s1710_s14 + $0x48] sm:$0xff] %v1733_v49 }
 0x419   : > { %1736 = vst [vmem:[%s1710_s14 + $0x50] sm:$0xff] %v1735_v29 }
 0x41a   : > { %1738 = vst [vmem:[%s1710_s14 + $0x58] sm:$0xff] %v1737_v30 }
 0x41b   : > { %1740 = vst [vmem:[%s1710_s14 + $0x80] sm:$0xff] %v1739_v31 }
 0x41c   : > { %1742 = vst [vmem:[%s1710_s14 + $0x88] sm:$0xff] %v1741_v32 }
 0x41d   : > { %1744 = vst [vmem:[%s1710_s14 + $0x90] sm:$0xff] %v1743_v33 }
 0x41e   : > { %1746 = vst [vmem:[%s1710_s14 + $0x98] sm:$0xff] %v1745_v34 }
 0x41f   : > { %1748 = vst [vmem:[%s1710_s14 + $0xc0] sm:$0xff] %v1747_v35 }
 0x420   : > { %1750 = vst [vmem:[%s1710_s14 + $0xc8] sm:$0xff] %v1749_v38 }
 0x421   : > { %1752 = vst [vmem:[%s1710_s14 + $0xd0] sm:$0xff] %v1751_v39 }
 0x422   : > { %1754 = vst [vmem:[%s1710_s14 + $0xd8] sm:$0xff] %v1753_v40 }
 0x423 PF: > { %p20_p13 = scmp.ge.s32.totalorder %s2301_s25, 4   ;;  %s2941_s21 = smov %s2208_s22 }
 0x424   : > { %s2942_s22 = smov %s2311_s28  ;;  %s2943_s23 = smov %s2301_s25 }
 0x425   :  { %22 = sbr.rel (!%p20_p13) target bundleno = 2 (0x2), region = 167 }

</bundles_post_ra>
